<compile_context>
chip_gen: v5e
topology: v5e:2x2
jax: 0.10.0
libtpu: 0.0.40
codegen_flags: <defaults>
</compile_context>

<pallas_src>
import functools

import jax
import jax.numpy as jnp
from jax.experimental import pallas as pl
from jax.experimental.pallas import tpu as pltpu

N_CLASSES = 4
HIDDEN = 64
GEOM_RAW = 25   # 9 (3x3 intrinsics) + 16 (4x4 extrinsics)
GEOM_PAD = 32   # padded to a sublane-friendly size
TILE_HW_BUDGET = 8192  # lanes per grid step; keeps per-step VMEM ~2-3 MiB (v7x-safe)


def _pick_tile_hw(hw, budget=TILE_HW_BUDGET):
    """Largest multiple of 128 that divides hw and is <= budget (or hw itself)."""
    if hw <= budget:
        return hw
    t = (budget // 128) * 128
    while t >= 128:
        if hw % t == 0:
            return t
        t -= 128
    # TODO(synk): pad HW to a multiple of 128 when no aligned divisor exists.
    return hw


def _encoder_uses_bf16():
    """bf16 VALU path on v6e/v7x; keep f32 on v5e and older (no bf16 VPU)."""
    try:
        kind = jax.devices()[0].device_kind.lower()
    except Exception:
        return True
    for old in ("v2", "v3", "v4", "v5"):
        if old in kind:
            return False
    return True


# --------------------------------------------------------------------------
# Fused kernel: geometry MLP + per-camera encoder + (modulation folded into
# head weights) + camera mean + classification head.
# One (batch, HW-tile) per grid step.
# --------------------------------------------------------------------------
def bev_kernel(x_ref, geom_ref, w1_ref, wg_ref, bg_ref, w2_ref, b2_ref, o_ref,
               *, compute_dtype):
    # x_ref    : (Ncam, Cin, TILE_HW)   bf16   pixels, HW on the lane axis
    # geom_ref : (Ncam, GEOM_PAD)       f32    per-camera geometry
    # w1_ref   : (HIDDEN, Cin)          f32    1x1-conv encoder weights
    # wg_ref   : (GEOM_PAD, HIDDEN)     f32    geometry MLP weights (transposed)
    # bg_ref   : (1, HIDDEN)            f32
    # w2_ref   : (N_CLASSES, HIDDEN)    f32    head weights
    # b2_ref   : (N_CLASSES, 1)         f32
    # o_ref    : (N_CLASSES, TILE_HW)   f32    lane-dense output
    n_cam, c_in, hw = x_ref.shape
    inv_n = 1.0 / n_cam

    # Geometry embedding (tiny, once per grid step):
    # (Ncam, GEOM_PAD) @ (GEOM_PAD, HIDDEN) -> (Ncam, HIDDEN); modulation = 1+tanh.
    g = jnp.dot(geom_ref[...], wg_ref[...], preferred_element_type=jnp.float32)
    # 1/Ncam camera mean folded into the modulation scale.
    g1 = (1.0 + jnp.tanh(g + bg_ref[...])) * inv_n          # (Ncam, HIDDEN) f32

    w1 = w1_ref[...].astype(compute_dtype)                   # (HIDDEN, Cin)
    w1_cols = [w1[:, c:c + 1] for c in range(c_in)]          # hoisted slices
    w2 = w2_ref[...]                                          # (N_CLASSES, HIDDEN) f32

    acc = jnp.zeros((N_CLASSES, hw), jnp.float32)
    for cam in range(n_cam):                                  # static unroll, Ncam small
        xc = x_ref[cam].astype(compute_dtype)                 # (Cin, TILE_HW)
        # 1x1 conv with K = Cin = 3 as VPU broadcast-FMAs (MXU would be ~97% padded).
        h = w1_cols[0] * xc[0:1, :]
        for c in range(1, c_in):
            h = h + w1_cols[c] * xc[c:c + 1, :]
        h = jnp.maximum(h, 0.0).astype(compute_dtype)         # ReLU, (HIDDEN, TILE_HW)
        # Geometry modulation folded into the head weights (exact: scale is on
        # the contraction axis), a 4x64 multiply instead of 64xTILE_HW.
        w2_cam = (w2 * g1[cam:cam + 1, :]).astype(compute_dtype)   # (N_CLASSES, HIDDEN)
        acc = acc + jnp.dot(w2_cam, h, preferred_element_type=jnp.float32)

    o_ref[...] = (acc + b2_ref[...]).astype(o_ref.dtype)


def bev_forward(x, geom, w1, wg_t, bg, w2, b2, *, compute_dtype):
    # x: (B, Ncam, Cin, HW) bf16, geom: (B, Ncam, GEOM_PAD) f32
    B, N, C, HW = x.shape
    tile_hw = _pick_tile_hw(HW)
    kernel = functools.partial(bev_kernel, compute_dtype=compute_dtype)
    return pl.pallas_call(
        kernel,
        out_shape=jax.ShapeDtypeStruct((B, N_CLASSES, HW), jnp.float32),
        grid_spec=pltpu.PrefetchScalarGridSpec(
            num_scalar_prefetch=0,
            grid=(B, HW // tile_hw),
            in_specs=[
                pl.BlockSpec((None, N, C, tile_hw), lambda b, t: (b, 0, 0, t)),   # x
                pl.BlockSpec((None, N, GEOM_PAD), lambda b, t: (b, 0, 0)),        # geom
                pl.BlockSpec((HIDDEN, C), lambda b, t: (0, 0)),                   # w1
                pl.BlockSpec((GEOM_PAD, HIDDEN), lambda b, t: (0, 0)),            # wg_t
                pl.BlockSpec((1, HIDDEN), lambda b, t: (0, 0)),                   # bg
                pl.BlockSpec((N_CLASSES, HIDDEN), lambda b, t: (0, 0)),           # w2
                pl.BlockSpec((N_CLASSES, 1), lambda b, t: (0, 0)),                # b2
            ],
            out_specs=pl.BlockSpec((None, N_CLASSES, tile_hw), lambda b, t: (b, 0, t)),
        ),
        compiler_params=pltpu.CompilerParams(
            dimension_semantics=("parallel", "parallel"),
            vmem_limit_bytes=64 * 1024 * 1024,
        ),
    )(x, geom, w1, wg_t, bg, w2, b2)


# --------------------------------------------------------------------------
# Wrapper mirroring Model.forward(images, intrinsics, extrinsics)
# --------------------------------------------------------------------------
def model_forward(params, images, intrinsics, extrinsics):
    """images: (B, Ncam, C, H, W) NCHW per camera (PyTorch convention).
    Returns (outs, seg_outs, depth_outs) == (outs, None, None)."""
    B, N, C, H, W = images.shape

    # Keep NCHW; only collapse the spatial dims so HW sits on lanes (no transpose).
    x = images.reshape(B, N, C, H * W).astype(jnp.bfloat16)

    # Per-camera geometry vector: flatten K (3x3) + E (4x4), pad 25 -> 32.
    geom = jnp.concatenate(
        [intrinsics.reshape(B, N, 9), extrinsics.reshape(B, N, 16)], axis=-1)
    geom = jnp.pad(geom, ((0, 0), (0, 0), (0, GEOM_PAD - GEOM_RAW))).astype(jnp.float32)

    compute_dtype = jnp.bfloat16 if _encoder_uses_bf16() else jnp.float32

    out = bev_forward(x, geom, params["w1"], params["wg"], params["bg"],
                      params["w2"], params["b2"],
                      compute_dtype=compute_dtype)            # (B, n_classes, HW)
    outs = out.reshape(B, N_CLASSES, H, W)                    # free reshape, already NCHW
    return outs, None, None


# --------------------------------------------------------------------------
# Pure-JAX reference for the stand-in architecture (for correctness check).
# --------------------------------------------------------------------------
def reference_forward(params, images, intrinsics, extrinsics):
    B, N, C, H, W = images.shape
    x = images.reshape(B, N, C, H * W).astype(jnp.bfloat16).astype(jnp.float32)
    geom = jnp.concatenate(
        [intrinsics.reshape(B, N, 9), extrinsics.reshape(B, N, 16)], axis=-1)
    geom = jnp.pad(geom, ((0, 0), (0, 0), (0, GEOM_PAD - GEOM_RAW))).astype(jnp.float32)

    g1 = 1.0 + jnp.tanh(
        jnp.einsum("bng,gh->bnh", geom, params["wg"]) + params["bg"][None])  # (B,N,Hid)
    h = jnp.einsum("hc,bncp->bnhp", params["w1"], x)                          # (B,N,Hid,HW)
    h = jnp.maximum(h, 0.0)
    h = h * g1[:, :, :, None]                                                 # modulation
    feat = h.mean(axis=1)                                                     # (B,Hid,HW)
    out = jnp.einsum("kh,bhp->bkp", params["w2"], feat) + params["b2"][None]
    return out.reshape(B, N_CLASSES, H, W)


def init_params(cin, key):
    k1, k2, k3 = jax.random.split(key, 3)
    return {
        "w1": jax.random.normal(k1, (HIDDEN, cin), jnp.float32) * 0.1,
        "wg": jax.random.normal(k2, (GEOM_PAD, HIDDEN), jnp.float32) * 0.1,
        "bg": jnp.zeros((1, HIDDEN), jnp.float32),
        "w2": jax.random.normal(k3, (N_CLASSES, HIDDEN), jnp.float32) * 0.1,
        "b2": jnp.zeros((N_CLASSES, 1), jnp.float32),
    }


if __name__ == "__main__":
    B, NCAM, C, H, W = 2, 4, 3, 16, 16

    key = jax.random.PRNGKey(0)
    k_img, k_intr, k_extr, k_par = jax.random.split(key, 4)
    images = jax.random.normal(k_img, (B, NCAM, C, H, W), jnp.float32)
    intrinsics = jax.random.normal(k_intr, (B, NCAM, 3, 3), jnp.float32)
    extrinsics = jax.random.normal(k_extr, (B, NCAM, 4, 4), jnp.float32)
    params = init_params(C, k_par)

    fwd = jax.jit(model_forward)
    outs, seg_outs, depth_outs = fwd(params, images, intrinsics, extrinsics)
    jax.block_until_ready(outs)

    assert outs.shape == (B, N_CLASSES, H, W), outs.shape
    assert seg_outs is None and depth_outs is None

    ref = reference_forward(params, images, intrinsics, extrinsics)
    max_diff = float(jnp.max(jnp.abs(outs - ref)))
    assert max_diff < 2e-2, f"max abs diff vs reference: {max_diff}"

    print("KERNEL_OK")
</pallas_src>

<mosaic_0001>
module attributes {stable_mosaic.version = 11 : i64} {
  func.func @bev_kernel(%arg0: i32, %arg1: i32, %arg2: memref<1x4x3x256xbf16, #tpu.memory_space<vmem>>, %arg3: memref<1x4x32xf32, #tpu.memory_space<vmem>>, %arg4: memref<64x3xf32, #tpu.memory_space<vmem>>, %arg5: memref<32x64xf32, #tpu.memory_space<vmem>>, %arg6: memref<1x64xf32, #tpu.memory_space<vmem>>, %arg7: memref<4x64xf32, #tpu.memory_space<vmem>>, %arg8: memref<4x1xf32, #tpu.memory_space<vmem>>, %arg9: memref<1x4x256xf32, #tpu.memory_space<vmem>>) attributes {dimension_semantics = [#tpu.dimension_semantics<parallel>, #tpu.dimension_semantics<parallel>], iteration_bounds = array<i64: 2, 1>, scalar_prefetch = 0 : i64, scratch_operands = 0 : i64, tpu.core_type = #tpu.core_type<tc>, window_params = [{transform_indices = @transform_0, window_bounds = array<i64: 1, 4, 3, 256>}, {transform_indices = @transform_1, window_bounds = array<i64: 1, 4, 32>}, {pipeline_mode = #tpu.pipeline_mode<synchronous>, transform_indices = @transform_2, window_bounds = array<i64: 64, 3>}, {pipeline_mode = #tpu.pipeline_mode<synchronous>, transform_indices = @transform_3, window_bounds = array<i64: 32, 64>}, {pipeline_mode = #tpu.pipeline_mode<synchronous>, transform_indices = @transform_4, window_bounds = array<i64: 1, 64>}, {pipeline_mode = #tpu.pipeline_mode<synchronous>, transform_indices = @transform_5, window_bounds = array<i64: 4, 64>}, {pipeline_mode = #tpu.pipeline_mode<synchronous>, transform_indices = @transform_6, window_bounds = array<i64: 4, 1>}, {transform_indices = @transform_7, window_bounds = array<i64: 1, 4, 256>}]} {
    %c0 = arith.constant 0 : index
    %c0_0 = arith.constant 0 : index
    %c0_1 = arith.constant 0 : index
    %0 = vector.load %arg3[%c0, %c0_0, %c0_1] : memref<1x4x32xf32, #tpu.memory_space<vmem>>, vector<1x4x32xf32>
    %1 = vector.shape_cast %0 : vector<1x4x32xf32> to vector<4x32xf32>
    %c0_2 = arith.constant 0 : index
    %c0_3 = arith.constant 0 : index
    %2 = vector.load %arg5[%c0_2, %c0_3] : memref<32x64xf32, #tpu.memory_space<vmem>>, vector<32x64xf32>
    %cst = arith.constant dense<0.000000e+00> : vector<4x64xf32>
    %3 = tpu.matmul %1, %2, %cst {dimension_numbers = #tpu.dot_dimension_numbers<[1], [0], [0], [1], [0, 0, 1, 1], [], []>} : vector<4x32xf32>, vector<32x64xf32>, vector<4x64xf32> -> vector<4x64xf32>
    %c0_4 = arith.constant 0 : index
    %c0_5 = arith.constant 0 : index
    %4 = vector.load %arg6[%c0_4, %c0_5] : memref<1x64xf32, #tpu.memory_space<vmem>>, vector<1x64xf32>
    %5 = vector.broadcast %4 : vector<1x64xf32> to vector<4x64xf32>
    %6 = arith.addf %3, %5 : vector<4x64xf32>
    %7 = math.tanh %6 : vector<4x64xf32>
    %cst_6 = arith.constant 1.000000e+00 : f32
    %8 = vector.broadcast %cst_6 : f32 to vector<4x64xf32>
    %9 = arith.addf %8, %7 : vector<4x64xf32>
    %cst_7 = arith.constant 2.500000e-01 : f32
    %10 = vector.broadcast %cst_7 : f32 to vector<4x64xf32>
    %11 = arith.mulf %9, %10 : vector<4x64xf32>
    %c0_8 = arith.constant 0 : index
    %c0_9 = arith.constant 0 : index
    %12 = vector.load %arg4[%c0_8, %c0_9] : memref<64x3xf32, #tpu.memory_space<vmem>>, vector<64x3xf32>
    %13 = arith.truncf %12 : vector<64x3xf32> to vector<64x3xbf16>
    %14 = vector.extract_strided_slice %13 {offsets = [0, 0], sizes = [64, 1], strides = [1, 1]} : vector<64x3xbf16> to vector<64x1xbf16>
    %15 = vector.extract_strided_slice %13 {offsets = [0, 1], sizes = [64, 1], strides = [1, 1]} : vector<64x3xbf16> to vector<64x1xbf16>
    %16 = vector.extract_strided_slice %13 {offsets = [0, 2], sizes = [64, 1], strides = [1, 1]} : vector<64x3xbf16> to vector<64x1xbf16>
    %c0_10 = arith.constant 0 : index
    %c0_11 = arith.constant 0 : index
    %17 = vector.load %arg7[%c0_10, %c0_11] : memref<4x64xf32, #tpu.memory_space<vmem>>, vector<4x64xf32>
    %cst_12 = arith.constant 0.000000e+00 : f32
    %18 = vector.broadcast %cst_12 : f32 to vector<4x256xf32>
    %c0_13 = arith.constant 0 : index
    %c0_14 = arith.constant 0 : index
    %c0_15 = arith.constant 0 : index
    %c0_16 = arith.constant 0 : index
    %19 = vector.load %arg2[%c0_13, %c0_14, %c0_15, %c0_16] : memref<1x4x3x256xbf16, #tpu.memory_space<vmem>>, vector<1x1x3x256xbf16>
    %20 = vector.shape_cast %19 : vector<1x1x3x256xbf16> to vector<3x256xbf16>
    %21 = vector.extract_strided_slice %20 {offsets = [0, 0], sizes = [1, 256], strides = [1, 1]} : vector<3x256xbf16> to vector<1x256xbf16>
    %22 = vector.broadcast %14 : vector<64x1xbf16> to vector<64x256xbf16>
    %23 = vector.broadcast %21 : vector<1x256xbf16> to vector<64x256xbf16>
    %24 = arith.mulf %22, %23 : vector<64x256xbf16>
    %25 = vector.extract_strided_slice %20 {offsets = [1, 0], sizes = [1, 256], strides = [1, 1]} : vector<3x256xbf16> to vector<1x256xbf16>
    %26 = vector.broadcast %15 : vector<64x1xbf16> to vector<64x256xbf16>
    %27 = vector.broadcast %25 : vector<1x256xbf16> to vector<64x256xbf16>
    %28 = arith.mulf %26, %27 : vector<64x256xbf16>
    %29 = arith.addf %24, %28 : vector<64x256xbf16>
    %30 = vector.extract_strided_slice %20 {offsets = [2, 0], sizes = [1, 256], strides = [1, 1]} : vector<3x256xbf16> to vector<1x256xbf16>
    %31 = vector.broadcast %16 : vector<64x1xbf16> to vector<64x256xbf16>
    %32 = vector.broadcast %30 : vector<1x256xbf16> to vector<64x256xbf16>
    %33 = arith.mulf %31, %32 : vector<64x256xbf16>
    %34 = arith.addf %29, %33 : vector<64x256xbf16>
    %cst_17 = arith.constant 0.000000e+00 : bf16
    %35 = vector.broadcast %cst_17 : bf16 to vector<64x256xbf16>
    %36 = arith.maximumf %34, %35 : vector<64x256xbf16>
    %37 = vector.extract_strided_slice %11 {offsets = [0, 0], sizes = [1, 64], strides = [1, 1]} : vector<4x64xf32> to vector<1x64xf32>
    %38 = vector.broadcast %37 : vector<1x64xf32> to vector<4x64xf32>
    %39 = arith.mulf %17, %38 : vector<4x64xf32>
    %40 = arith.truncf %39 : vector<4x64xf32> to vector<4x64xbf16>
    %cst_18 = arith.constant dense<0.000000e+00> : vector<4x256xf32>
    %41 = tpu.matmul %40, %36, %cst_18 {dimension_numbers = #tpu.dot_dimension_numbers<[1], [0], [0], [1], [0, 0, 1, 1], [], []>} : vector<4x64xbf16>, vector<64x256xbf16>, vector<4x256xf32> -> vector<4x256xf32>
    %42 = arith.addf %18, %41 : vector<4x256xf32>
    %c0_19 = arith.constant 0 : index
    %c1 = arith.constant 1 : index
    %c0_20 = arith.constant 0 : index
    %c0_21 = arith.constant 0 : index
    %43 = vector.load %arg2[%c0_19, %c1, %c0_20, %c0_21] : memref<1x4x3x256xbf16, #tpu.memory_space<vmem>>, vector<1x1x3x256xbf16>
    %44 = vector.shape_cast %43 : vector<1x1x3x256xbf16> to vector<3x256xbf16>
    %45 = vector.extract_strided_slice %44 {offsets = [0, 0], sizes = [1, 256], strides = [1, 1]} : vector<3x256xbf16> to vector<1x256xbf16>
    %46 = vector.broadcast %14 : vector<64x1xbf16> to vector<64x256xbf16>
    %47 = vector.broadcast %45 : vector<1x256xbf16> to vector<64x256xbf16>
    %48 = arith.mulf %46, %47 : vector<64x256xbf16>
    %49 = vector.extract_strided_slice %44 {offsets = [1, 0], sizes = [1, 256], strides = [1, 1]} : vector<3x256xbf16> to vector<1x256xbf16>
    %50 = vector.broadcast %15 : vector<64x1xbf16> to vector<64x256xbf16>
    %51 = vector.broadcast %49 : vector<1x256xbf16> to vector<64x256xbf16>
    %52 = arith.mulf %50, %51 : vector<64x256xbf16>
    %53 = arith.addf %48, %52 : vector<64x256xbf16>
    %54 = vector.extract_strided_slice %44 {offsets = [2, 0], sizes = [1, 256], strides = [1, 1]} : vector<3x256xbf16> to vector<1x256xbf16>
    %55 = vector.broadcast %16 : vector<64x1xbf16> to vector<64x256xbf16>
    %56 = vector.broadcast %54 : vector<1x256xbf16> to vector<64x256xbf16>
    %57 = arith.mulf %55, %56 : vector<64x256xbf16>
    %58 = arith.addf %53, %57 : vector<64x256xbf16>
    %cst_22 = arith.constant 0.000000e+00 : bf16
    %59 = vector.broadcast %cst_22 : bf16 to vector<64x256xbf16>
    %60 = arith.maximumf %58, %59 : vector<64x256xbf16>
    %61 = vector.extract_strided_slice %11 {offsets = [1, 0], sizes = [1, 64], strides = [1, 1]} : vector<4x64xf32> to vector<1x64xf32>
    %62 = vector.broadcast %61 : vector<1x64xf32> to vector<4x64xf32>
    %63 = arith.mulf %17, %62 : vector<4x64xf32>
    %64 = arith.truncf %63 : vector<4x64xf32> to vector<4x64xbf16>
    %cst_23 = arith.constant dense<0.000000e+00> : vector<4x256xf32>
    %65 = tpu.matmul %64, %60, %cst_23 {dimension_numbers = #tpu.dot_dimension_numbers<[1], [0], [0], [1], [0, 0, 1, 1], [], []>} : vector<4x64xbf16>, vector<64x256xbf16>, vector<4x256xf32> -> vector<4x256xf32>
    %66 = arith.addf %42, %65 : vector<4x256xf32>
    %c0_24 = arith.constant 0 : index
    %c2 = arith.constant 2 : index
    %c0_25 = arith.constant 0 : index
    %c0_26 = arith.constant 0 : index
    %67 = vector.load %arg2[%c0_24, %c2, %c0_25, %c0_26] : memref<1x4x3x256xbf16, #tpu.memory_space<vmem>>, vector<1x1x3x256xbf16>
    %68 = vector.shape_cast %67 : vector<1x1x3x256xbf16> to vector<3x256xbf16>
    %69 = vector.extract_strided_slice %68 {offsets = [0, 0], sizes = [1, 256], strides = [1, 1]} : vector<3x256xbf16> to vector<1x256xbf16>
    %70 = vector.broadcast %14 : vector<64x1xbf16> to vector<64x256xbf16>
    %71 = vector.broadcast %69 : vector<1x256xbf16> to vector<64x256xbf16>
    %72 = arith.mulf %70, %71 : vector<64x256xbf16>
    %73 = vector.extract_strided_slice %68 {offsets = [1, 0], sizes = [1, 256], strides = [1, 1]} : vector<3x256xbf16> to vector<1x256xbf16>
    %74 = vector.broadcast %15 : vector<64x1xbf16> to vector<64x256xbf16>
    %75 = vector.broadcast %73 : vector<1x256xbf16> to vector<64x256xbf16>
    %76 = arith.mulf %74, %75 : vector<64x256xbf16>
    %77 = arith.addf %72, %76 : vector<64x256xbf16>
    %78 = vector.extract_strided_slice %68 {offsets = [2, 0], sizes = [1, 256], strides = [1, 1]} : vector<3x256xbf16> to vector<1x256xbf16>
    %79 = vector.broadcast %16 : vector<64x1xbf16> to vector<64x256xbf16>
    %80 = vector.broadcast %78 : vector<1x256xbf16> to vector<64x256xbf16>
    %81 = arith.mulf %79, %80 : vector<64x256xbf16>
    %82 = arith.addf %77, %81 : vector<64x256xbf16>
    %cst_27 = arith.constant 0.000000e+00 : bf16
    %83 = vector.broadcast %cst_27 : bf16 to vector<64x256xbf16>
    %84 = arith.maximumf %82, %83 : vector<64x256xbf16>
    %85 = vector.extract_strided_slice %11 {offsets = [2, 0], sizes = [1, 64], strides = [1, 1]} : vector<4x64xf32> to vector<1x64xf32>
    %86 = vector.broadcast %85 : vector<1x64xf32> to vector<4x64xf32>
    %87 = arith.mulf %17, %86 : vector<4x64xf32>
    %88 = arith.truncf %87 : vector<4x64xf32> to vector<4x64xbf16>
    %cst_28 = arith.constant dense<0.000000e+00> : vector<4x256xf32>
    %89 = tpu.matmul %88, %84, %cst_28 {dimension_numbers = #tpu.dot_dimension_numbers<[1], [0], [0], [1], [0, 0, 1, 1], [], []>} : vector<4x64xbf16>, vector<64x256xbf16>, vector<4x256xf32> -> vector<4x256xf32>
    %90 = arith.addf %66, %89 : vector<4x256xf32>
    %c0_29 = arith.constant 0 : index
    %c3 = arith.constant 3 : index
    %c0_30 = arith.constant 0 : index
    %c0_31 = arith.constant 0 : index
    %91 = vector.load %arg2[%c0_29, %c3, %c0_30, %c0_31] : memref<1x4x3x256xbf16, #tpu.memory_space<vmem>>, vector<1x1x3x256xbf16>
    %92 = vector.shape_cast %91 : vector<1x1x3x256xbf16> to vector<3x256xbf16>
    %93 = vector.extract_strided_slice %92 {offsets = [0, 0], sizes = [1, 256], strides = [1, 1]} : vector<3x256xbf16> to vector<1x256xbf16>
    %94 = vector.broadcast %14 : vector<64x1xbf16> to vector<64x256xbf16>
    %95 = vector.broadcast %93 : vector<1x256xbf16> to vector<64x256xbf16>
    %96 = arith.mulf %94, %95 : vector<64x256xbf16>
    %97 = vector.extract_strided_slice %92 {offsets = [1, 0], sizes = [1, 256], strides = [1, 1]} : vector<3x256xbf16> to vector<1x256xbf16>
    %98 = vector.broadcast %15 : vector<64x1xbf16> to vector<64x256xbf16>
    %99 = vector.broadcast %97 : vector<1x256xbf16> to vector<64x256xbf16>
    %100 = arith.mulf %98, %99 : vector<64x256xbf16>
    %101 = arith.addf %96, %100 : vector<64x256xbf16>
    %102 = vector.extract_strided_slice %92 {offsets = [2, 0], sizes = [1, 256], strides = [1, 1]} : vector<3x256xbf16> to vector<1x256xbf16>
    %103 = vector.broadcast %16 : vector<64x1xbf16> to vector<64x256xbf16>
    %104 = vector.broadcast %102 : vector<1x256xbf16> to vector<64x256xbf16>
    %105 = arith.mulf %103, %104 : vector<64x256xbf16>
    %106 = arith.addf %101, %105 : vector<64x256xbf16>
    %cst_32 = arith.constant 0.000000e+00 : bf16
    %107 = vector.broadcast %cst_32 : bf16 to vector<64x256xbf16>
    %108 = arith.maximumf %106, %107 : vector<64x256xbf16>
    %109 = vector.extract_strided_slice %11 {offsets = [3, 0], sizes = [1, 64], strides = [1, 1]} : vector<4x64xf32> to vector<1x64xf32>
    %110 = vector.broadcast %109 : vector<1x64xf32> to vector<4x64xf32>
    %111 = arith.mulf %17, %110 : vector<4x64xf32>
    %112 = arith.truncf %111 : vector<4x64xf32> to vector<4x64xbf16>
    %cst_33 = arith.constant dense<0.000000e+00> : vector<4x256xf32>
    %113 = tpu.matmul %112, %108, %cst_33 {dimension_numbers = #tpu.dot_dimension_numbers<[1], [0], [0], [1], [0, 0, 1, 1], [], []>} : vector<4x64xbf16>, vector<64x256xbf16>, vector<4x256xf32> -> vector<4x256xf32>
    %114 = arith.addf %90, %113 : vector<4x256xf32>
    %c0_34 = arith.constant 0 : index
    %c0_35 = arith.constant 0 : index
    %115 = vector.load %arg8[%c0_34, %c0_35] : memref<4x1xf32, #tpu.memory_space<vmem>>, vector<4x1xf32>
    %116 = vector.broadcast %115 : vector<4x1xf32> to vector<4x256xf32>
    %117 = arith.addf %114, %116 : vector<4x256xf32>
    %c0_36 = arith.constant 0 : index
    %c0_37 = arith.constant 0 : index
    %c0_38 = arith.constant 0 : index
    %118 = vector.load %arg9[%c0_36, %c0_37, %c0_38] : memref<1x4x256xf32, #tpu.memory_space<vmem>>, vector<1x4x256xf32>
    %119 = vector.shape_cast %118 : vector<1x4x256xf32> to vector<4x256xf32>
    %120 = vector.shape_cast %117 : vector<4x256xf32> to vector<1x4x256xf32>
    tpu.vector_store %arg9[%c0_36, %c0_37, %c0_38], %120 {strides = array<i32>} : memref<1x4x256xf32, #tpu.memory_space<vmem>>, vector<1x4x256xf32>,
    return
  }
  func.func @transform_0(%arg0: i32, %arg1: i32) -> (i32, i32, i32, i32) {
    %c0_i32 = arith.constant 0 : i32
    %c0_i32_0 = arith.constant 0 : i32
    %c0_i32_1 = arith.constant 0 : i32
    return %arg0, %c0_i32, %c0_i32_0, %arg1 : i32, i32, i32, i32
  }
  func.func @transform_1(%arg0: i32, %arg1: i32) -> (i32, i32, i32) {
    %c0_i32 = arith.constant 0 : i32
    %c0_i32_0 = arith.constant 0 : i32
    %c0_i32_1 = arith.constant 0 : i32
    return %arg0, %c0_i32, %c0_i32_0 : i32, i32, i32
  }
  func.func @transform_2(%arg0: i32, %arg1: i32) -> (i32, i32) {
    %c0_i32 = arith.constant 0 : i32
    %c0_i32_0 = arith.constant 0 : i32
    %c0_i32_1 = arith.constant 0 : i32
    return %c0_i32, %c0_i32_0 : i32, i32
  }
  func.func @transform_3(%arg0: i32, %arg1: i32) -> (i32, i32) {
    %c0_i32 = arith.constant 0 : i32
    %c0_i32_0 = arith.constant 0 : i32
    %c0_i32_1 = arith.constant 0 : i32
    return %c0_i32, %c0_i32_0 : i32, i32
  }
  func.func @transform_4(%arg0: i32, %arg1: i32) -> (i32, i32) {
    %c0_i32 = arith.constant 0 : i32
    %c0_i32_0 = arith.constant 0 : i32
    %c0_i32_1 = arith.constant 0 : i32
    return %c0_i32, %c0_i32_0 : i32, i32
  }
  func.func @transform_5(%arg0: i32, %arg1: i32) -> (i32, i32) {
    %c0_i32 = arith.constant 0 : i32
    %c0_i32_0 = arith.constant 0 : i32
    %c0_i32_1 = arith.constant 0 : i32
    return %c0_i32, %c0_i32_0 : i32, i32
  }
  func.func @transform_6(%arg0: i32, %arg1: i32) -> (i32, i32) {
    %c0_i32 = arith.constant 0 : i32
    %c0_i32_0 = arith.constant 0 : i32
    %c0_i32_1 = arith.constant 0 : i32
    return %c0_i32, %c0_i32_0 : i32, i32
  }
  func.func @transform_7(%arg0: i32, %arg1: i32) -> (i32, i32, i32) {
    %c0_i32 = arith.constant 0 : i32
    %c0_i32_0 = arith.constant 0 : i32
    return %arg0, %c0_i32, %arg1 : i32, i32, i32
  }
}

</mosaic_0001>

<bundles_post_ra>
// kernel: model_forward.1
= control target key start
LH: loop header
LB: loop body
LE: loop exit
PB: predicated region body
PF: predicated region fallthrough
CT: control target
= control target key end

     0   :  { %s2048_s24 = smov 0   ;;  %s2050_s25 = smov 0   ;;  %s2832_s0 = inlined_call_operand.vmem [shape: bf16[2,4,3,256], index: 0, kind: input, shape index: {}]   ;;  %s2833_s1 = inlined_call_operand.vmem [shape: f32[2,4,32], index: 1, kind: input, shape index: {}]   ;;  %s2834_s2 = inlined_call_operand.vmem [shape: f32[64,3], index: 2, kind: input, shape index: {}]   ;;  %s2835_s3 = inlined_call_operand.vmem [shape: f32[32,64], index: 3, kind: input, shape index: {}]   ;;  %s2836_s4 = inlined_call_operand.vmem [shape: f32[1,64], index: 4, kind: input, shape index: {}]   ;;  %s2837_s5 = inlined_call_operand.vmem [shape: f32[4,64], index: 5, kind: input, shape index: {}]   ;;  %s2838_s6 = inlined_call_operand.vmem [shape: f32[4,1], index: 6, kind: input, shape index: {}]   ;;  %s2839_s7 = inlined_call_operand.vmem [shape: f32[2,4,256], index: 7, kind: output, shape index: {}]  }
   0x1   :  { %s2052_s26 = smov 0  }
   0x2 LB: > { %s29_s27 = sadd.s32 1, %s1998_s25  ;;  %p1911_p0 = scmp.ge.s32.totalorder %s2002_s26, 1  ;;  %s2002_s26 = sphi %s2052_s26, %s17_s26   ;;  %s1998_s25 = sphi %s2050_s25, %s2901_s25   ;;  %s1994_s24 = sphi %s2048_s24, %s2900_s24  }
   0x3   : > { %p31_p1 = scmp.ge.s32.totalorder %s29_s27, 2  ;;  %p267_p2 = scmp.lt.s32.totalorder %s2002_s26, 3 }
   0x5   : > { %s2903_s27 = smov (%p31_p1, %s29_s27), 0  ;;  %p268_p3 = pnand %p1911_p0, %p267_p2 }
   0x7   : > { %271 = sbr.rel (%p268_p3) target bundleno = 502 (0x1f6), region = 48 }
   0xc   : > { %v378_v0 = vld [vmem:[%s2834_s2 + $0x30] sm:$0xff]  ;;  %v376_v1 = vld [vmem:[%s2834_s2 + $0x20] sm:$0xff]  ;;  %v2004_v2 = vmov 1   ;;  %v2005_v3 = vmov 0   ;;  %p312_p4 = scmp.lt.s32.totalorder %s1994_s24, 1  ;;  %v379_v6 = vld [vmem:[%s2834_s2 + $0x38] sm:$0xff] }
   0xd   : > { %1962 = vset.pattern.permute.xlu1 %v2004_v2  ;;  %1963 = vset.pattern.permute.xlu2 %v2005_v3  ;;  %v386_v4 = vpack.c.bf16 %v378_v0, %v378_v0  ;;  %v2074_v5 = vpack.c.bf16 %v376_v1, %v376_v1  ;;  %v377_v7 = vld [vmem:[%s2834_s2 + $0x28] sm:$0xff]  ;;  %v387_v8 = vpack.c.bf16 %v379_v6, %v379_v6  ;;  %v375_v11 = vld [vmem:[%s2834_s2 + $0x18] sm:$0xff]  ;;  %v2006_v15 = vmov 2   ;;  %v372_v16 = vld [vmem:[%s2834_s2] sm:$0xff] }
   0xe   : > { %1961 = vset.pattern.permute.xlu0 %v2005_v3  ;;  %s2905_s24 = smov (!%p312_p4, %s1994_s24), 1  ;;  %v385_v10 = vpack.c.bf16 %v377_v7, %v377_v7  ;;  %v2096_v12 = vpack.c.bf16 %v375_v11, %v375_v11  ;;  %v374_v17 = vld [vmem:[%s2834_s2 + $0x10] sm:$0xff]  ;;  %v340_v18 = vld [vmem:[%s2835_s3 + $0x18] sm:$0xff]  ;;  %v380_v19 = vpack.c.bf16 %v372_v16, %v372_v16  ;;  %v338_v23 = vld [vmem:[%s2835_s3 + $0x8] sm:$0xff]  ;;  %vm345_vm0 = vcmask 261120  }
   0xf   : > { %555 = vperm.xlu1 %1962, %v386_v4   ;;  %446 = vperm.xlu0 %1961, %v386_v4   ;;  %s1931_s13 = sshll.u32 %s2905_s24, 4  ;;  %s1914_s29 = sshll.u32 %s2905_s24, 2  ;;  %v339_v22 = vld [vmem:[%s2835_s3 + $0x10] sm:$0xff]  ;;  %v382_v24 = vpack.c.bf16 %v374_v17, %v374_v17  ;;  %v337_v25 = vld [vmem:[%s2835_s3] sm:$0xff]  ;;  %v373_v30 = vld [vmem:[%s2834_s2 + $0x8] sm:$0xff]  ;;  %vm1142_vm1 = vcmask 523264  }
  0x10   : > { %428 = vperm.xlu2 %1963, %v2074_v5   ;;  %s2090_s16 = scalar_lea.vmem %s2832_s0, %s1931_s13  ;;  %361 = vmatpush.msra.mxu0 %v340_v18  ;;  %s324_s13 = scalar_lea.vmem %s2833_s1, %s1914_s29  ;;  %v381_v33 = vpack.c.bf16 %v373_v30, %v373_v30  ;;  %v2007_v40 = vmov 839922192   ;;  %vm1804_vm2 = vcmask 1043456  }
  0x11   : > { %v389_v9 = vld [vmem:[%s2090_s16] sm:$0xf]  ;;  %v1918_v27 = vld [vmem:[%s2090_s16 + $0x4] sm:$0xf]  ;;  %v2146_v36 = vld [vmem:[%s2090_s16 + $0x8] sm:$0xf]  ;;  %v396_v41 = vunpack.c.l.s4 %v2007_v40 }
  0x12   : > { %463 = vst [vmem:[#allocation1] ss:$4 sm:$0xff] %v389_v9  ;;  %362 = vmatpush.msra.mxu0 %v339_v22  ;;  %v336_v26 = vld [vmem:[%s324_s13] sm:$0xf]  ;;  %s1932_s28 = sshll.u32 %s2905_s24, 3 }
  0x13   : > { %v2152_v43 = vunpack.c.0.s8 %v396_v41  ;;  %s333_s8 = scalar_lea.vmem %s2839_s7, %s1932_s28 }
  0x14   : > { %363 = vmatpush.msra.mxu0 %v338_v23 }
  0x16   : > { %364 = vmatpush.msra.mxu0 %v337_v25 }
  0x17   : > { %563 = vperm.xlu1 %1962, %v387_v8   ;;  %455 = vperm.xlu0 %1961, %v387_v8  }
  0x18   : > { %437 = vperm.xlu2 %1963, %v385_v10   ;;  %1917 = vmatmul.msk.f32.vlgmr.msra.gmra.mxu0 %vm345_vm0, %v336_v26 }
  0x19   : > { %v2098_v13 = vld.sshfl [vmem:[#allocation1] sm:$0xff pattern:$0x73625140]  ;;  %v2100_v14 = vld.sshfl [vmem:[#allocation1 + $0x8] sm:$0xff pattern:$0x73625140] }
  0x1a   : > { %570 = vst [vmem:[#allocation1] ss:$4 sm:$0xff] %v389_v9  ;;  %v466_v45 = vpack.i.b16 %v2098_v13, %v2098_v13  ;;  %v469_v46 = vpack.i.b16 %v2100_v14, %v2100_v14 }
  0x1c   : > { %v468_v54 = vperm.slane %v466_v45, 0  ;;  %v471_v55 = vperm.slane %v469_v46, 0 }
  0x1f   : > { %547 = vperm.xlu1 %1962, %v385_v10   ;;  %419 = vperm.xlu0 %1961, %v2096_v12  }
  0x20   : > { %1964 = vset.pattern.permute.xlu2 %v2006_v15 }
  0x21   : > { %720 = vperm.xlu2 %1964, %v386_v4   ;;  %v2113_v20 = vld.sshfl [vmem:[#allocation1] sm:$0xff pattern:$0x73625140]  ;;  %v2115_v21 = vld.sshfl [vmem:[#allocation1 + $0x8] sm:$0xff pattern:$0x73625140]  ;;  %v2172_v4 = vunpack.c.l.bf16 %v468_v54 }
  0x22   : > { %735 = vst [vmem:[#allocation1] ss:$4 sm:$0xff] %v389_v9  ;;  %v573_v58 = vshrl.u32 %v2113_v20, 16  ;;  %v577_v59 = vshrl.u32 %v2115_v21, 16 }
  0x24   : > { %v578_v14 = vpack.i.b16 %v577_v59, %v577_v59 }
  0x26   : > { %v580_v30 = vperm.slane %v578_v14, 0 }
  0x27   : > { %1965 = vset.pattern.permute.xlu1 %v2006_v15  ;;  %392 = vperm.xlu0 %1961, %v380_v19  }
  0x28   : > { %728 = vperm.xlu1 %1965, %v387_v8   ;;  %v574_v8 = vpack.i.b16 %v573_v58, %v573_v58 }
  0x29   : > { %1966 = vset.pattern.permute.xlu2 %v2005_v3  ;;  %v2131_v28 = vld.sshfl [vmem:[#allocation1] sm:$0xff pattern:$0x73625140]  ;;  %v2133_v29 = vld.sshfl [vmem:[#allocation1 + $0x8] sm:$0xff pattern:$0x73625140] }
  0x2a   : > { %410 = vperm.xlu2 %1966, %v382_v24   ;;  %880 = vst [vmem:[#allocation1] ss:$4 sm:$0xff] %v1918_v27  ;;  %v738_v60 = vpack.i.b16 %v2131_v28, %v2131_v28  ;;  %v741_v61 = vpack.i.b16 %v2133_v29, %v2133_v29  ;;  %v576_v29 = vperm.slane %v574_v8, 0 }
  0x2c   : > { %v740_v9 = vperm.slane %v738_v60, 1 }
  0x2f   : > { %1971 = vset.pattern.permute.xlu0 %v2004_v2 }
  0x30   : > { %1967 = vset.pattern.permute.xlu1 %v2004_v2  ;;  %539 = vperm.xlu0 %1971, %v2074_v5  }
  0x31   : > { %523 = vperm.xlu1 %1967, %v382_v24   ;;  %v881_v31 = vld.sshfl [vmem:[#allocation1] sm:$0xff pattern:$0x73625140]  ;;  %v882_v32 = vld.sshfl [vmem:[#allocation1 + $0x8] sm:$0xff pattern:$0x73625140] }
  0x32   : > { %1968 = vset.pattern.permute.xlu2 %v2004_v2  ;;  %915 = vst [vmem:[#allocation1] ss:$4 sm:$0xff] %v1918_v27  ;;  %v883_v42 = vpack.i.b16 %v881_v31, %v881_v31  ;;  %v886_v44 = vpack.i.b16 %v882_v32, %v882_v32 }
  0x33   : > { %531 = vperm.xlu2 %1968, %v2096_v12  }
  0x34   : > { %v885_v48 = vperm.slane %v883_v42, 0  ;;  %v888_v53 = vperm.slane %v886_v44, 0 }
  0x36   : > { %v2166_v62 = vunpack.c.l.bf16 %v885_v48 }
  0x38   : > { %515 = vperm.xlu0 %1971, %v381_v33  }
  0x39   : > { %1969 = vset.pattern.permute.xlu1 %v2006_v15  ;;  %v916_v34 = vld.sshfl [vmem:[#allocation1] sm:$0xff pattern:$0x73625140]  ;;  %v917_v35 = vld.sshfl [vmem:[#allocation1 + $0x8] sm:$0xff pattern:$0x73625140] }
  0x3a   : > { %704 = vperm.xlu1 %1969, %v2074_v5   ;;  %1008 = vst [vmem:[#allocation1] ss:$4 sm:$0xff] %v1918_v27  ;;  %v918_v49 = vshrl.u32 %v916_v34, 16  ;;  %v922_v50 = vshrl.u32 %v917_v35, 16  ;;  %v2174_v5 = vunpack.c.l.bf16 %v471_v55 }
  0x3b   : > { %1970 = vset.pattern.permute.xlu2 %v2006_v15 }
  0x3c   : > { %712 = vperm.xlu2 %1970, %v385_v10   ;;  %v919_v63 = vpack.i.b16 %v918_v49, %v918_v49  ;;  %v923_v0 = vpack.i.b16 %v922_v50, %v922_v50  ;;  %v743_v10 = vperm.slane %v741_v61, 1  ;;  %v2232_v49 = vunpack.c.l.bf16 %v576_v29 }
  0x3d   : > { %v2234_v50 = vunpack.c.l.bf16 %v580_v30 }
  0x3e   : > { %v921_v11 = vperm.slane %v919_v63, 0  ;;  %v2197_v25 = vunpack.c.l.bf16 %v743_v10 }
  0x40   : > { %1976 = vset.pattern.permute.xlu0 %v2005_v3  ;;  %v2213_v35 = vunpack.c.l.bf16 %v921_v11 }
  0x41   : > { %v1009_v37 = vld.sshfl [vmem:[#allocation1] sm:$0xff pattern:$0x73625140]  ;;  %v1010_v38 = vld.sshfl [vmem:[#allocation1 + $0x8] sm:$0xff pattern:$0x73625140] }
  0x42   : > { %1972 = vset.pattern.permute.xlu1 %v2005_v3  ;;  %1204 = vst [vmem:[#allocation1] ss:$4 sm:$0xff] %v2146_v36  ;;  %v1011_v51 = vpack.i.b16 %v1009_v37, %v1009_v37  ;;  %v1014_v57 = vpack.i.b16 %v1010_v38, %v1010_v38  ;;  %v2170_v3 = vunpack.c.l.bf16 %v888_v53 }
  0x43   : > { %401 = vperm.xlu1 %1972, %v381_v33  }
  0x44   : > { %1973 = vset.pattern.permute.xlu2 %v2004_v2  ;;  %v1013_v1 = vperm.slane %v1011_v51, 1  ;;  %v1016_v7 = vperm.slane %v1014_v57, 1 }
  0x45   : > { %507 = vperm.xlu2 %1973, %v380_v19  }
  0x46   : > { %v2178_v13 = vunpack.c.l.bf16 %v1013_v1  ;;  %v2189_v21 = vunpack.c.l.bf16 %v1016_v7 }
  0x49   : > { %v2211_v34 = vld.sshfl [vmem:[#allocation1 + $0x8] sm:$0xff pattern:$0x73625140] }
  0x4b   : > { %1974 = vset.pattern.permute.xlu1 %v2006_v15 }
  0x4c   : > { %688 = vperm.xlu1 %1974, %v382_v24   ;;  %v2195_v24 = vunpack.c.l.bf16 %v740_v9 }
  0x4d   : > { %1975 = vset.pattern.permute.xlu2 %v2006_v15 }
  0x4e   : > { %696 = vperm.xlu2 %1975, %v2096_v12   ;;  %v925_v12 = vperm.slane %v923_v0, 0 }
  0x50   : > { %v2222_v42 = vunpack.c.l.bf16 %v925_v12 }
  0x54   : > { %672 = vperm.xlu1 %1974, %v380_v19  }
  0x56   : > { %680 = vperm.xlu2 %1975, %v381_v33   ;;  %v2209_v33 = vld.sshfl [vmem:[#allocation1] sm:$0xff pattern:$0x73625140] }
  0x57   : > { %1239 = vst [vmem:[#allocation1] ss:$4 sm:$0xff] %v2146_v36 }
  0x6a   : > { %v429_v39 = vpop.permute.xlu2 %428 }
  0x6b   : > { %v434_v52 = vperm.slane %v429_v39, %v2152_v43 }
  0x6d   : > { %v2168_v2 = vunpack.c.l.bf16 %v434_v52 }
  0x6f   : > { %2865 = vst [vmem:[#allocation2_spill] sm:$0xff] %v2168_v2  ;;  %v899_v16 = vmul.f32 %v2166_v62, %v2168_v2  ;;  %v900_v17 = vmul.f32 %v2170_v3, %v2168_v2  ;;  %v490_v18 = vmul.f32 %v2172_v4, %v2168_v2  ;;  %v491_v19 = vmul.f32 %v2174_v5, %v2168_v2 }
  0x71   : > { %v2205_v31 = vpack.c.bf16 %v900_v17, %v899_v16  ;;  %v2207_v32 = vpack.c.bf16 %v491_v19, %v490_v18 }
  0x72   : > { %v438_v47 = vpop.permute.xlu2 %437 }
  0x73   : > { %v443_v56 = vperm.slane %v438_v47, %v2152_v43 }
  0x75   : > { %v2176_v6 = vunpack.c.l.bf16 %v443_v56 }
  0x77   : > { %2866 = vst [vmem:[#allocation3_spill] sm:$0xff] %v2176_v6  ;;  %v901_v22 = vmul.f32 %v2166_v62, %v2176_v6  ;;  %v902_v23 = vmul.f32 %v2170_v3, %v2176_v6  ;;  %v492_v26 = vmul.f32 %v2172_v4, %v2176_v6  ;;  %v493_v27 = vmul.f32 %v2174_v5, %v2176_v6 }
  0x79   : > { %v2219_v39 = vpack.c.bf16 %v902_v23, %v901_v22  ;;  %v2228_v46 = vpack.c.bf16 %v493_v27, %v492_v26 }
  0x7b   : > { %v721_v15 = vpop.permute.xlu2 %720  ;;  %v962_v59 = vunpack.c.l.bf16 %v2219_v39 }
  0x7c   : > { %v726_v20 = vperm.slane %v721_v15, %v2152_v43 }
  0x7e   : > { %v2203_v28 = vunpack.c.l.bf16 %v726_v20 }
  0x80   : > { %2867 = vst [vmem:[#allocation4_spill] sm:$0xff] %v2203_v28  ;;  %v1031_v37 = vmul.f32 %v2178_v13, %v2203_v28  ;;  %v1032_v38 = vmul.f32 %v2189_v21, %v2203_v28  ;;  %v766_v44 = vmul.f32 %v2195_v24, %v2203_v28  ;;  %v767_v45 = vmul.f32 %v2197_v25, %v2203_v28 }
  0x81   : > { %v556_v40 = vpop.permute.xlu1 %555  ;;  %v447_v41 = vpop.permute.xlu0 %446 }
  0x82   : > { %v561_v47 = vperm.slane %v556_v40, %v2152_v43  ;;  %v452_v48 = vperm.slane %v447_v41, %v2152_v43  ;;  %v2244_v58 = vpack.c.bf16 %v1032_v38, %v1031_v37  ;;  %v2247_v60 = vpack.c.bf16 %v767_v45, %v766_v44 }
  0x84   : > { %v2240_v55 = vunpack.c.l.bf16 %v561_v47  ;;  %v2242_v56 = vunpack.c.l.bf16 %v452_v48  ;;  %v411_v57 = vpop.permute.xlu2 %410  ;;  %v1071_v17 = vunpack.c.l.bf16 %v2244_v58  ;;  %v1072_v22 = vunpack.c.h.bf16 %v2244_v58 }
  0x85   : > { %v416_v10 = vperm.slane %v411_v57, %v2152_v43  ;;  %v806_v26 = vunpack.c.l.bf16 %v2247_v60  ;;  %v807_v27 = vunpack.c.h.bf16 %v2247_v60 }
  0x86   : > { %v903_v1 = vmul.f32 %v2166_v62, %v2242_v56  ;;  %v904_v7 = vmul.f32 %v2170_v3, %v2242_v56  ;;  %v940_v8 = vmul.f32 %v2213_v35, %v2240_v55  ;;  %v941_v9 = vmul.f32 %v2222_v42, %v2240_v55 }
  0x87   : > { %v494_v11 = vmul.f32 %v2172_v4, %v2242_v56  ;;  %v495_v12 = vmul.f32 %v2174_v5, %v2242_v56  ;;  %v603_v14 = vmul.f32 %v2232_v49, %v2240_v55  ;;  %v604_v18 = vmul.f32 %v2234_v50, %v2240_v55 }
  0x88   : > { %v913_v15 = vpack.c.bf16 %v904_v7, %v903_v1  ;;  %v950_v16 = vpack.c.bf16 %v941_v9, %v940_v8  ;;  %v2275_v40 = vunpack.c.l.bf16 %v416_v10 }
  0x89   : > { %v564_v19 = vpop.permute.xlu1 %563  ;;  %v456_v20 = vpop.permute.xlu0 %455  ;;  %v504_v23 = vpack.c.bf16 %v495_v12, %v494_v11  ;;  %v613_v45 = vpack.c.bf16 %v604_v18, %v603_v14 }
  0x8a   : > { %v569_v29 = vperm.slane %v564_v19, %v2152_v43  ;;  %v461_v30 = vperm.slane %v456_v20, %v2152_v43  ;;  %v964_v37 = vunpack.c.l.bf16 %v913_v15  ;;  %v965_v38 = vunpack.c.h.bf16 %v913_v15  ;;  %2868 = vst [vmem:[#allocation5_spill] sm:$0xff] %v2275_v40 }
  0x8b   : > { %v980_v41 = vunpack.c.l.bf16 %v950_v16  ;;  %v981_v44 = vunpack.c.h.bf16 %v950_v16  ;;  %v627_v57 = vunpack.c.l.bf16 %v504_v23  ;;  %v628_v58 = vunpack.c.h.bf16 %v504_v23 }
  0x8c   : > { %v2277_v47 = vunpack.c.l.bf16 %v569_v29  ;;  %v2279_v48 = vunpack.c.l.bf16 %v461_v30  ;;  %v643_v9 = vunpack.c.l.bf16 %v613_v45  ;;  %v644_v11 = vunpack.c.h.bf16 %v613_v45 }
  0x8d   : > { %v532_v1 = vpop.permute.xlu2 %531  ;;  %v996_v7 = vadd.f32 %v980_v41, %v964_v37  ;;  %v997_v8 = vadd.f32 %v981_v44, %v965_v38 }
  0x8e   : > { %v537_v12 = vperm.slane %v532_v1, %v2152_v43  ;;  %v905_v10 = vmul.f32 %v2166_v62, %v2279_v48  ;;  %v906_v15 = vmul.f32 %v2170_v3, %v2279_v48  ;;  %v942_v14 = vmul.f32 %v2213_v35, %v2277_v47 }
  0x8f   : > { %v943_v16 = vmul.f32 %v2222_v42, %v2277_v47  ;;  %v1006_v18 = vpack.c.bf16 %v997_v8, %v996_v7  ;;  %v496_v19 = vmul.f32 %v2172_v4, %v2279_v48  ;;  %v497_v20 = vmul.f32 %v2174_v5, %v2279_v48 }
  0x90   : > { %v2294_v23 = vunpack.c.l.bf16 %v537_v12  ;;  %v914_v29 = vpack.c.bf16 %v906_v15, %v905_v10  ;;  %v605_v30 = vmul.f32 %v2232_v49, %v2277_v47  ;;  %v606_v37 = vmul.f32 %v2234_v50, %v2277_v47 }
  0x91   : > { %v548_v38 = vpop.permute.xlu1 %547  ;;  %v420_v41 = vpop.permute.xlu0 %419  ;;  %v951_v44 = vpack.c.bf16 %v943_v16, %v942_v14  ;;  %v1055_v45 = vunpack.c.l.bf16 %v1006_v18  ;;  %v1056_v1 = vunpack.c.h.bf16 %v1006_v18  ;;  %v505_v7 = vpack.c.bf16 %v497_v20, %v496_v19 }
  0x92   : > { %2869 = vst [vmem:[#allocation6_spill] sm:$0xff] %v2294_v23  ;;  %v553_v8 = vperm.slane %v548_v38, %v2152_v43  ;;  %v425_v54 = vperm.slane %v420_v41, %v2152_v43  ;;  %v966_v53 = vunpack.c.l.bf16 %v914_v29  ;;  %v967_v12 = vunpack.c.h.bf16 %v914_v29 }
  0x93   : > { %v982_v52 = vunpack.c.l.bf16 %v951_v44  ;;  %v983_v10 = vunpack.c.h.bf16 %v951_v44  ;;  %v2302_v15 = vadd.f32 %v1071_v17, %v1055_v45  ;;  %v2304_v51 = vadd.f32 %v1072_v22, %v1056_v1 }
  0x94   : > { %v2306_v0 = vunpack.c.l.bf16 %v553_v8  ;;  %v2308_v63 = vunpack.c.l.bf16 %v425_v54  ;;  %v614_v14 = vpack.c.bf16 %v606_v37, %v605_v30  ;;  %v629_v16 = vunpack.c.l.bf16 %v505_v7 }
  0x95   : > { %v998_v18 = vadd.f32 %v982_v52, %v966_v53  ;;  %v999_v19 = vadd.f32 %v983_v10, %v967_v12  ;;  %v630_v29 = vunpack.c.h.bf16 %v505_v7  ;;  %v659_v17 = vadd.f32 %v643_v9, %v627_v57 }
  0x96   : > { %2870 = vst [vmem:[#allocation7_spill] sm:$0xff] %v2306_v0  ;;  %v713_v41 = vpop.permute.xlu2 %712  ;;  %v645_v61 = vunpack.c.l.bf16 %v614_v14  ;;  %v646_v44 = vunpack.c.h.bf16 %v614_v14  ;;  %v660_v1 = vadd.f32 %v644_v11, %v628_v58  ;;  %v938_v54 = vmul.f32 %v2213_v35, %v2306_v0 }
  0x97   : > { %2871 = vst [vmem:[#allocation8_spill] sm:$0xff] %v2308_v63  ;;  %v718_v22 = vperm.slane %v713_v41, %v2152_v43  ;;  %v2313_v45 = vpack.c.bf16 %v999_v19, %v998_v18  ;;  %v939_v53 = vmul.f32 %v2222_v42, %v2306_v0  ;;  %v601_v37 = vmul.f32 %v2232_v49, %v2306_v0 }
  0x98   : > { %v661_v30 = vadd.f32 %v645_v61, %v629_v16  ;;  %v662_v52 = vadd.f32 %v646_v44, %v630_v29  ;;  %v669_v12 = vpack.c.bf16 %v660_v1, %v659_v17  ;;  %v602_v14 = vmul.f32 %v2234_v50, %v2306_v0 }
  0x99   : > { %v2321_v7 = vunpack.c.l.bf16 %v718_v22  ;;  %v393_v8 = vpop.permute.xlu0 %392  ;;  %v1057_v57 = vunpack.c.l.bf16 %v2313_v45  ;;  %v1058_v9 = vunpack.c.h.bf16 %v2313_v45  ;;  %v949_v61 = vpack.c.bf16 %v939_v53, %v938_v54 }
  0x9a   : > { %v398_v58 = vperm.slane %v393_v8, %v2152_v43  ;;  %v729_v11 = vpop.permute.xlu1 %728  ;;  %v670_v10 = vpack.c.bf16 %v662_v52, %v661_v30  ;;  %v790_v18 = vunpack.c.l.bf16 %v669_v12  ;;  %v791_v19 = vunpack.c.h.bf16 %v669_v12 }
  0x9b   : > { %2872 = vst [vmem:[#allocation9_spill] sm:$0xff] %v2321_v7  ;;  %v734_v16 = vperm.slane %v729_v11, %v2152_v43  ;;  %v1029_v41 = vmul.f32 %v2178_v13, %v2321_v7  ;;  %v978_v17 = vunpack.c.l.bf16 %v949_v61  ;;  %v979_v30 = vunpack.c.h.bf16 %v949_v61 }
  0x9c   : > { %v2331_v29 = vunpack.c.l.bf16 %v398_v58  ;;  %v792_v44 = vunpack.c.l.bf16 %v670_v10  ;;  %v793_v22 = vunpack.c.h.bf16 %v670_v10  ;;  %v822_v1 = vadd.f32 %v806_v26, %v790_v18 }
  0x9d   : > { %v2333_v45 = vunpack.c.l.bf16 %v734_v16  ;;  %v823_v54 = vadd.f32 %v807_v27, %v791_v19  ;;  %v994_v52 = vadd.f32 %v978_v17, %v962_v59  ;;  %v1030_v53 = vmul.f32 %v2189_v21, %v2321_v7 }
  0x9e   : > { %v2343_v8 = vpack.c.bf16 %v602_v14, %v601_v37  ;;  %v2347_v12 = vmul.f32 %v2195_v24, %v2321_v7  ;;  %v862_v11 = vmax.f32 %v822_v1, 0.0  ;;  %v2874_v61 = vunpack.c.h.bf16 %v2219_v39 }
  0x9f   : > { %2873 = vst [vmem:[#allocation10_spill] sm:$0xff] %v2333_v45  ;;  %v508_v58 = vpop.permute.xlu2 %507  ;;  %v1033_v26 = vmul.f32 %v2178_v13, %v2333_v45  ;;  %v1034_v60 = vmul.f32 %v2189_v21, %v2333_v45  ;;  %v768_v27 = vmul.f32 %v2195_v24, %v2333_v45  ;;  %v769_v59 = vmul.f32 %v2197_v25, %v2333_v45 }
  0xa0   : > { %v513_v37 = vperm.slane %v508_v58, %v2152_v43  ;;  %v863_v10 = vmax.f32 %v823_v54, 0.0  ;;  %v995_v14 = vadd.f32 %v979_v30, %v2874_v61  ;;  %v1040_v19 = vpack.c.bf16 %v1030_v53, %v1029_v41 }
  0xa1   : > { %v1042_v16 = vpack.c.bf16 %v1034_v60, %v1033_v26  ;;  %v777_v18 = vpack.c.bf16 %v769_v59, %v768_v27  ;;  %v641_v17 = vunpack.c.l.bf16 %v2343_v8  ;;  %v642_v6 = vunpack.c.h.bf16 %v2343_v8 }
  0xa2   : > { %v2361_v38 = vunpack.c.l.bf16 %v513_v37  ;;  %v540_v20 = vpop.permute.xlu0 %539  ;;  %v1005_v0 = vpack.c.bf16 %v995_v14, %v994_v52  ;;  %v765_v2 = vmul.f32 %v2197_v25, %v2321_v7  ;;  %v1069_v60 = vunpack.c.l.bf16 %v1040_v19 }
  0xa3   : > { %v545_v1 = vperm.slane %v540_v20, %v2152_v43  ;;  %v524_v54 = vpop.permute.xlu1 %523  ;;  %v1073_v58 = vunpack.c.l.bf16 %v1042_v16  ;;  %v1074_v39 = vunpack.c.h.bf16 %v1042_v16  ;;  %v808_v30 = vunpack.c.l.bf16 %v777_v18 }
  0xa4   : > { %v529_v26 = vperm.slane %v524_v54, %v2152_v43  ;;  %v809_v41 = vunpack.c.h.bf16 %v777_v18  ;;  %v1053_v53 = vunpack.c.l.bf16 %v1005_v0  ;;  %v1054_v20 = vunpack.c.h.bf16 %v1005_v0 }
  0xa5   : > { %v2368_v27 = vunpack.c.l.bf16 %v545_v1  ;;  %v1089_v59 = vadd.f32 %v1073_v58, %v1057_v57  ;;  %v1090_v52 = vadd.f32 %v1074_v39, %v1058_v9  ;;  %v824_v37 = vadd.f32 %v808_v30, %v792_v44 }
  0xa6   : > { %v2370_v8 = vunpack.c.l.bf16 %v529_v26  ;;  %v825_v61 = vadd.f32 %v809_v41, %v793_v22  ;;  %v2372_v14 = vadd.f32 %v1069_v60, %v1053_v53  ;;  %v1070_v9 = vunpack.c.h.bf16 %v1040_v19  ;;  %v1977_v19 = vld [vmem:[%s2836_s4] ss:$0 sm:$0xff] }
  0xa7   : > { %2875 = vst [vmem:[#allocation11_spill] sm:$0xff] %v2368_v27  ;;  %v1129_v7 = vmax.f32 %v1089_v59, 0.0  ;;  %v1130_v45 = vmax.f32 %v1090_v52, 0.0  ;;  %v864_v16 = vmax.f32 %v824_v37, 0.0  ;;  %v936_v54 = vmul.f32 %v2213_v35, %v2368_v27 }
  0xa8   : > { %2876 = vst [vmem:[#allocation12_spill] sm:$0xff] %v2370_v8  ;;  %v697_v18 = vpop.permute.xlu2 %696  ;;  %v865_v28 = vmax.f32 %v825_v61, 0.0  ;;  %v937_v1 = vmul.f32 %v2222_v42, %v2368_v27  ;;  %v1125_v57 = vmax.f32 %v2372_v14, 0.0  ;;  %v2877_v22 = vmax.f32 %v2302_v15, 0.0 }
  0xa9   : > { %v702_v44 = vperm.slane %v697_v18, %v2152_v43  ;;  %v2878_v0 = vmax.f32 %v2304_v51, 0.0  ;;  %v872_v30 = vpack.c.bf16 %v864_v16, %v862_v11  ;;  %v2384_v60 = vadd.f32 %v1070_v9, %v1054_v20 }
  0xaa   : > { %v1137_v58 = vpack.c.bf16 %v1129_v7, %v2877_v22  ;;  %v873_v26 = vpack.c.bf16 %v865_v28, %v863_v10  ;;  %v516_v41 = vpop.permute.xlu0 %515  ;;  %v948_v53 = vpack.c.bf16 %v937_v1, %v936_v54  ;;  %v599_v59 = vmul.f32 %v2232_v49, %v2368_v27 }
  0xab   : > { %v1138_v39 = vpack.c.bf16 %v1130_v45, %v2878_v0  ;;  %v2391_v52 = vunpack.c.l.bf16 %v702_v44  ;;  %v521_v51 = vperm.slane %v516_v41, %v2152_v43  ;;  %v600_v28 = vmul.f32 %v2234_v50, %v2368_v27  ;;  %v366_v45 = vpop.f32.mrf.mxu0  ;;  %1179 = vmatpush.bf16.msra.mxu3 %v872_v30 }
  0xac   : > { %1150 = vmatpush.bf16.msra.mxu1 %v1137_v58  ;;  %v2879_v15 = vunpack.c.l.bf16 %v2228_v46  ;;  %1192 = vmatpush.bf16.msrb.mxu0 %v873_v26  ;;  %v705_v11 = vpop.permute.xlu1 %704  ;;  %v976_v10 = vunpack.c.l.bf16 %v948_v53  ;;  %v977_v37 = vunpack.c.h.bf16 %v948_v53  ;;  %v1126_v61 = vmax.f32 %v2384_v60, 0.0 }
  0xad   : > { %1163 = vmatpush.bf16.msra.mxu2 %v1138_v39  ;;  %v2880_v20 = vunpack.c.h.bf16 %v2228_v46  ;;  %v710_v54 = vperm.slane %v705_v11, %v2152_v43  ;;  %v2402_v18 = vunpack.c.l.bf16 %v521_v51  ;;  %v611_v1 = vpack.c.bf16 %v600_v28, %v599_v59 }
  0xae   : > { %v657_v7 = vadd.f32 %v641_v17, %v2879_v15  ;;  %v775_v9 = vpack.c.bf16 %v765_v2, %v2347_v12  ;;  %v2881_v17 = vunpack.c.l.bf16 %v2205_v31  ;;  %v2882_v22 = vunpack.c.h.bf16 %v2205_v31 }
  0xaf   : > { %v658_v16 = vadd.f32 %v642_v6, %v2880_v20  ;;  %v367_v39 = vadd.f32 %v1977_v19, %v366_v45  ;;  %v2409_v30 = vunpack.c.l.bf16 %v710_v54  ;;  %v639_v26 = vunpack.c.l.bf16 %v611_v1  ;;  %v2420_v45 = vld.sshfl [vmem:[#allocation1 + $0x8] sm:$0xff pattern:$0x73625140] }
  0xb0   : > { %v992_v44 = vadd.f32 %v976_v10, %v2881_v17  ;;  %v993_v58 = vadd.f32 %v977_v37, %v2882_v22  ;;  %v640_v46 = vunpack.c.h.bf16 %v611_v1  ;;  %v804_v6 = vunpack.c.l.bf16 %v775_v9  ;;  %v681_v41 = vpop.permute.xlu2 %680 }
  0xb1   : > { %v668_v0 = vpack.c.bf16 %v658_v16, %v657_v7  ;;  %2883 = vst [vmem:[#allocation13_spill] sm:$0xff] %v2409_v30  ;;  %v805_v59 = vunpack.c.h.bf16 %v775_v9  ;;  %v686_v2 = vperm.slane %v681_v41, %v2152_v43  ;;  %v1027_v12 = vmul.f32 %v2178_v13, %v2409_v30  ;;  %v2418_v7 = vld.sshfl [vmem:[#allocation1] sm:$0xff pattern:$0x73625140] }
  0xb2   : > { %v1004_v53 = vpack.c.bf16 %v993_v58, %v992_v44  ;;  %v1028_v31 = vmul.f32 %v2189_v21, %v2409_v30  ;;  %v2884_v19 = vunpack.c.l.bf16 %v2207_v32  ;;  %v2885_v37 = vunpack.c.h.bf16 %v2207_v32  ;;  %1332 = vst [vmem:[#allocation1] ss:$4 sm:$0xff] %v2146_v36 }
  0xb3   : > { %v788_v51 = vunpack.c.l.bf16 %v668_v0  ;;  %v789_v15 = vunpack.c.h.bf16 %v668_v0  ;;  %v762_v16 = vmul.f32 %v2195_v24, %v2409_v30  ;;  %v2427_v54 = vunpack.c.l.bf16 %v686_v2 }
  0xb4   : > { %v655_v28 = vadd.f32 %v639_v26, %v2884_v19  ;;  %v1051_v11 = vunpack.c.l.bf16 %v1004_v53  ;;  %v1052_v10 = vunpack.c.h.bf16 %v1004_v53  ;;  %v656_v20 = vadd.f32 %v640_v46, %v2885_v37 }
  0xb5   : > { %v1039_v1 = vpack.c.bf16 %v1028_v31, %v1027_v12  ;;  %v763_v9 = vmul.f32 %v2197_v25, %v2409_v30  ;;  %v820_v17 = vadd.f32 %v804_v6, %v788_v51  ;;  %v821_v22 = vadd.f32 %v805_v59, %v789_v15  ;;  %v402_v32 = vpop.permute.xlu1 %401 }
  0xb6   : > { %v667_v44 = vpack.c.bf16 %v656_v20, %v655_v28  ;;  %1978 = vtanh.f32 %v367_v39  ;;  %v895_v58 = vmul.f32 %v2166_v62, %v2275_v40  ;;  %v407_v36 = vperm.slane %v402_v32, %v2152_v43 }
  0xb7   : > { %v1067_v0 = vunpack.c.l.bf16 %v1039_v1  ;;  %v1068_v26 = vunpack.c.h.bf16 %v1039_v1  ;;  %v774_v46 = vpack.c.bf16 %v763_v9, %v762_v16  ;;  %v860_v41 = vmax.f32 %v820_v17, 0.0 }
  0xb8   : > { %v786_v53 = vunpack.c.l.bf16 %v667_v44  ;;  %v787_v2 = vunpack.c.h.bf16 %v667_v44  ;;  %v861_v12 = vmax.f32 %v821_v22, 0.0  ;;  %v2434_v15 = vunpack.c.l.bf16 %v407_v36 }
  0xb9   : > { %v1083_v31 = vadd.f32 %v1067_v0, %v1051_v11  ;;  %v1084_v19 = vadd.f32 %v1068_v26, %v1052_v10  ;;  %v802_v6 = vunpack.c.l.bf16 %v774_v46  ;;  %v803_v51 = vunpack.c.h.bf16 %v774_v46  ;;  %v2443_v11 = vld [vmem:[%s2090_s16 + $0xc] sm:$0xf]  ;;  %v2453_v36 = vld.sshfl [vmem:[#allocation1] sm:$0xff pattern:$0x73625140] }
  0xba   : > { %v896_v39 = vmul.f32 %v2170_v3, %v2275_v40  ;;  %v897_v59 = vmul.f32 %v2166_v62, %v2308_v63  ;;  %v898_v28 = vmul.f32 %v2170_v3, %v2308_v63  ;;  %v932_v44 = vmul.f32 %v2213_v35, %v2370_v8 }
  0xbb   : > { %v1123_v37 = vmax.f32 %v1083_v31, 0.0  ;;  %v1124_v20 = vmax.f32 %v1084_v19, 0.0  ;;  %v818_v16 = vadd.f32 %v802_v6, %v786_v53  ;;  %v819_v1 = vadd.f32 %v803_v51, %v787_v2  ;;  %v2459_v19 = vld.sshfl [vmem:[#allocation1 + $0x8] sm:$0xff pattern:$0x73625140] }
  0xbc   : > { %v1979_v9 = vpop.eup %1978  ;;  %v909_v10 = vpack.c.bf16 %v896_v39, %v895_v58  ;;  %v910_v17 = vpack.c.bf16 %v898_v28, %v897_v59  ;;  %v933_v22 = vmul.f32 %v2222_v42, %v2370_v8  ;;  %v934_v58 = vmul.f32 %v2213_v35, %v2294_v23  ;;  %1500 = vst [vmem:[#allocation1] ss:$4 sm:$0xff] %v2443_v11 }
  0xbd   : > { %v1135_v32 = vpack.c.bf16 %v1125_v57, %v1123_v37  ;;  %v1136_v0 = vpack.c.bf16 %v1126_v61, %v1124_v20  ;;  %v858_v26 = vmax.f32 %v818_v16, 0.0  ;;  %v859_v46 = vmax.f32 %v819_v1, 0.0 }
  0xbe   : > { %v370_v53 = vadd.f32 1.0, %v1979_v9  ;;  %v935_v2 = vmul.f32 %v2222_v42, %v2294_v23  ;;  %v946_v31 = vpack.c.bf16 %v933_v22, %v932_v44  ;;  %v956_v60 = vunpack.c.l.bf16 %v909_v10  ;;  %v689_v6 = vpop.permute.xlu1 %688 }
  0xbf   : > { %1151 = vmatpush.bf16.msra.mxu1 %v1135_v32  ;;  %1164 = vmatpush.bf16.msra.mxu2 %v1136_v0  ;;  %v870_v14 = vpack.c.bf16 %v860_v41, %v858_v26  ;;  %v871_v57 = vpack.c.bf16 %v861_v12, %v859_v46  ;;  %v957_v61 = vunpack.c.h.bf16 %v909_v10  ;;  %v958_v59 = vunpack.c.l.bf16 %v910_v17 }
  0xc0   : > { %v2462_v51 = vmul.f32 0.25, %v370_v53  ;;  %v947_v39 = vpack.c.bf16 %v935_v2, %v934_v58  ;;  %v959_v28 = vunpack.c.h.bf16 %v910_v17  ;;  %v694_v37 = vperm.slane %v689_v6, %v2152_v43 }
  0xc1   : > { %1180 = vmatpush.bf16.msra.mxu3 %v870_v14  ;;  %1193 = vmatpush.bf16.msrb.mxu0 %v871_v57  ;;  %v972_v20 = vunpack.c.l.bf16 %v946_v31  ;;  %v973_v16 = vunpack.c.h.bf16 %v946_v31  ;;  %v1025_v41 = vmul.f32 %v2178_v13, %v2391_v52  ;;  %v1026_v9 = vmul.f32 %v2189_v21, %v2391_v52 }
  0xc2   : > { %2886 = vst [vmem:[#allocation14_spill] sm:$0xff] %v2462_v51  ;;  %v974_v12 = vunpack.c.l.bf16 %v947_v39  ;;  %v975_v1 = vunpack.c.h.bf16 %v947_v39  ;;  %v486_v10 = vmul.f32 %v2172_v4, %v2275_v40  ;;  %v2471_v44 = vunpack.c.l.bf16 %v694_v37 }
  0xc3   : > { %v988_v17 = vadd.f32 %v972_v20, %v956_v60  ;;  %v989_v22 = vadd.f32 %v973_v16, %v957_v61  ;;  %v487_v32 = vmul.f32 %v2174_v5, %v2275_v40  ;;  %v1038_v46 = vpack.c.bf16 %v1026_v9, %v1025_v41  ;;  %v2483_v39 = vld.sshfl [vmem:[#allocation1] sm:$0xff pattern:$0x73625140] }
  0xc4   : > { %v990_v0 = vadd.f32 %v974_v12, %v958_v59  ;;  %v991_v26 = vadd.f32 %v975_v1, %v959_v28  ;;  %v488_v53 = vmul.f32 %v2172_v4, %v2308_v63  ;;  %v1023_v2 = vmul.f32 %v2178_v13, %v2471_v44  ;;  %v2485_v59 = vld.sshfl [vmem:[#allocation1 + $0x8] sm:$0xff pattern:$0x73625140] }
  0xc5   : > { %v1002_v58 = vpack.c.bf16 %v989_v22, %v988_v17  ;;  %v1024_v31 = vmul.f32 %v2189_v21, %v2471_v44  ;;  %v489_v14 = vmul.f32 %v2174_v5, %v2308_v63  ;;  %v1065_v60 = vunpack.c.l.bf16 %v1038_v46  ;;  %1535 = vst [vmem:[#allocation1] ss:$4 sm:$0xff] %v2443_v11 }
  0xc6   : > { %v1003_v57 = vpack.c.bf16 %v991_v26, %v990_v0  ;;  %v1066_v61 = vunpack.c.h.bf16 %v1038_v46  ;;  %v500_v6 = vpack.c.bf16 %v487_v32, %v486_v10  ;;  %v673_v41 = vpop.permute.xlu1 %672  ;;  %v595_v9 = vmul.f32 %v2232_v49, %v2370_v8 }
  0xc7   : > { %v1037_v28 = vpack.c.bf16 %v1024_v31, %v1023_v2  ;;  %v1047_v37 = vunpack.c.l.bf16 %v1002_v58  ;;  %v1048_v20 = vunpack.c.h.bf16 %v1002_v58  ;;  %v501_v16 = vpack.c.bf16 %v489_v14, %v488_v53 }
  0xc8   : > { %v1049_v12 = vunpack.c.l.bf16 %v1003_v57  ;;  %v1050_v1 = vunpack.c.h.bf16 %v1003_v57  ;;  %v596_v17 = vmul.f32 %v2234_v50, %v2370_v8  ;;  %v678_v10 = vperm.slane %v673_v41, %v2152_v43 }
  0xc9   : > { %v1063_v22 = vunpack.c.l.bf16 %v1037_v28  ;;  %v1064_v32 = vunpack.c.h.bf16 %v1037_v28  ;;  %v597_v0 = vmul.f32 %v2232_v49, %v2294_v23  ;;  %v598_v53 = vmul.f32 %v2234_v50, %v2294_v23 }
  0xca   : > { %v1081_v26 = vadd.f32 %v1065_v60, %v1049_v12  ;;  %v1082_v46 = vadd.f32 %v1066_v61, %v1050_v1  ;;  %v609_v58 = vpack.c.bf16 %v596_v17, %v595_v9  ;;  %v2497_v2 = vunpack.c.l.bf16 %v678_v10 }
  0xcb   : > { %v1079_v31 = vadd.f32 %v1063_v22, %v1047_v37  ;;  %v1080_v14 = vadd.f32 %v1064_v32, %v1048_v20  ;;  %v619_v57 = vunpack.c.l.bf16 %v500_v6  ;;  %v610_v40 = vpack.c.bf16 %v598_v53, %v597_v0 }
  0xcc   : > { %v1121_v63 = vmax.f32 %v1081_v26, 0.0  ;;  %v1122_v8 = vmax.f32 %v1082_v46, 0.0  ;;  %v620_v43 = vunpack.c.h.bf16 %v500_v6  ;;  %v621_v30 = vunpack.c.l.bf16 %v501_v16 }
  0xcd   : > { %v1119_v41 = vmax.f32 %v1079_v31, 0.0  ;;  %v1120_v28 = vmax.f32 %v1080_v14, 0.0  ;;  %v622_v27 = vunpack.c.h.bf16 %v501_v16  ;;  %v635_v51 = vunpack.c.l.bf16 %v609_v58 }
  0xce   : > { %v636_v60 = vunpack.c.h.bf16 %v609_v58  ;;  %v637_v61 = vunpack.c.l.bf16 %v610_v40  ;;  %v638_v12 = vunpack.c.h.bf16 %v610_v40  ;;  %v758_v9 = vmul.f32 %v2195_v24, %v2471_v44 }
  0xcf   : > { %v1133_v1 = vpack.c.bf16 %v1121_v63, %v1119_v41  ;;  %v1134_v23 = vpack.c.bf16 %v1122_v8, %v1120_v28  ;;  %v759_v37 = vmul.f32 %v2197_v25, %v2471_v44  ;;  %v651_v20 = vadd.f32 %v635_v51, %v619_v57 }
  0xd0   : > { %v652_v17 = vadd.f32 %v636_v60, %v620_v43  ;;  %v653_v10 = vadd.f32 %v637_v61, %v621_v30  ;;  %v654_v6 = vadd.f32 %v638_v12, %v622_v27  ;;  %v760_v16 = vmul.f32 %v2195_v24, %v2391_v52 }
  0xd1   : > { %1152 = vmatpush.bf16.msra.mxu1 %v1133_v1  ;;  %1165 = vmatpush.bf16.msra.mxu2 %v1134_v23  ;;  %v761_v40 = vmul.f32 %v2197_v25, %v2391_v52  ;;  %v772_v63 = vpack.c.bf16 %v759_v37, %v758_v9  ;;  %v1242_v8 = vshrl.u32 %v2418_v7, 16  ;;  %v891_v0 = vmul.f32 %v2166_v62, %v2331_v29 }
  0xd2   : > { %v665_v22 = vpack.c.bf16 %v652_v17, %v651_v20  ;;  %v666_v32 = vpack.c.bf16 %v654_v6, %v653_v10  ;;  %v892_v30 = vmul.f32 %v2170_v3, %v2331_v29  ;;  %v893_v26 = vmul.f32 %v2166_v62, %v2434_v15 }
  0xd3   : > { %v773_v27 = vpack.c.bf16 %v761_v40, %v760_v16  ;;  %v798_v51 = vunpack.c.l.bf16 %v772_v63  ;;  %v799_v23 = vunpack.c.h.bf16 %v772_v63  ;;  %v894_v43 = vmul.f32 %v2170_v3, %v2434_v15 }
  0xd4   : > { %v782_v46 = vunpack.c.l.bf16 %v665_v22  ;;  %v784_v53 = vunpack.c.l.bf16 %v666_v32  ;;  %v783_v58 = vunpack.c.h.bf16 %v665_v22  ;;  %v785_v31 = vunpack.c.h.bf16 %v666_v32  ;;  %v2524_v22 = vld.sshfl [vmem:[#allocation1] sm:$0xff pattern:$0x73625140] }
  0xd5   : > { %v800_v14 = vunpack.c.l.bf16 %v773_v27  ;;  %v801_v57 = vunpack.c.h.bf16 %v773_v27  ;;  %v907_v41 = vpack.c.bf16 %v892_v30, %v891_v0  ;;  %v928_v61 = vmul.f32 %v2213_v35, %v2361_v38 }
  0xd6   : > { %v814_v28 = vadd.f32 %v798_v51, %v782_v46  ;;  %v815_v60 = vadd.f32 %v799_v23, %v783_v58  ;;  %v929_v12 = vmul.f32 %v2222_v42, %v2361_v38  ;;  %v908_v9 = vpack.c.bf16 %v894_v43, %v893_v26  ;;  %v2526_v51 = vld.sshfl [vmem:[#allocation1 + $0x8] sm:$0xff pattern:$0x73625140] }
  0xd7   : > { %v816_v1 = vadd.f32 %v800_v14, %v784_v53  ;;  %v817_v62 = vadd.f32 %v801_v57, %v785_v31  ;;  %v930_v37 = vmul.f32 %v2213_v35, %v2402_v18  ;;  %v931_v3 = vmul.f32 %v2222_v42, %v2402_v18  ;;  %1628 = vst [vmem:[#allocation1] ss:$4 sm:$0xff] %v2443_v11 }
  0xd8   : > { %v854_v20 = vmax.f32 %v814_v28, 0.0  ;;  %v855_v17 = vmax.f32 %v815_v60, 0.0  ;;  %v944_v10 = vpack.c.bf16 %v929_v12, %v928_v61  ;;  %v952_v40 = vunpack.c.l.bf16 %v907_v41 }
  0xd9   : > { %v856_v6 = vmax.f32 %v816_v1, 0.0  ;;  %v857_v16 = vmax.f32 %v817_v62, 0.0  ;;  %v953_v63 = vunpack.c.h.bf16 %v907_v41  ;;  %v945_v32 = vpack.c.bf16 %v931_v3, %v930_v37 }
  0xda   : > { %v954_v0 = vunpack.c.l.bf16 %v908_v9  ;;  %v955_v30 = vunpack.c.h.bf16 %v908_v9  ;;  %v968_v27 = vunpack.c.l.bf16 %v944_v10  ;;  %v969_v26 = vunpack.c.h.bf16 %v944_v10 }
  0xdb   : > { %v868_v23 = vpack.c.bf16 %v856_v6, %v854_v20  ;;  %v869_v35 = vpack.c.bf16 %v857_v16, %v855_v17  ;;  %v1019_v46 = vmul.f32 %v2178_v13, %v2497_v2  ;;  %v970_v42 = vunpack.c.l.bf16 %v945_v32 }
  0xdc   : > { %v971_v53 = vunpack.c.h.bf16 %v945_v32  ;;  %v984_v58 = vadd.f32 %v968_v27, %v952_v40  ;;  %v1020_v31 = vmul.f32 %v2189_v21, %v2497_v2  ;;  %v985_v14 = vadd.f32 %v969_v26, %v953_v63 }
  0xdd   : > { %1181 = vmatpush.bf16.msra.mxu3 %v868_v23  ;;  %1194 = vmatpush.bf16.msrb.mxu0 %v869_v35  ;;  %v1021_v57 = vmul.f32 %v2178_v13, %v2427_v54  ;;  %v1022_v43 = vmul.f32 %v2189_v21, %v2427_v54  ;;  %v1246_v41 = vshrl.u32 %v2420_v45, 16  ;;  %v986_v28 = vadd.f32 %v970_v42, %v954_v0 }
  0xde   : > { %v987_v60 = vadd.f32 %v971_v53, %v955_v30  ;;  %v1035_v11 = vpack.c.bf16 %v1020_v31, %v1019_v46  ;;  %v482_v61 = vmul.f32 %v2172_v4, %v2331_v29  ;;  %v1000_v12 = vpack.c.bf16 %v985_v14, %v984_v58 }
  0xdf   : > { %v1036_v1 = vpack.c.bf16 %v1022_v43, %v1021_v57  ;;  %v483_v62 = vmul.f32 %v2174_v5, %v2331_v29  ;;  %v484_v9 = vmul.f32 %v2172_v4, %v2434_v15  ;;  %v485_v21 = vmul.f32 %v2174_v5, %v2434_v15 }
  0xe0   : > { %v1001_v13 = vpack.c.bf16 %v987_v60, %v986_v28  ;;  %v1059_v37 = vunpack.c.l.bf16 %v1035_v11  ;;  %v1060_v20 = vunpack.c.h.bf16 %v1035_v11  ;;  %v1043_v45 = vunpack.c.l.bf16 %v1000_v12 }
  0xe1   : > { %v1061_v17 = vunpack.c.l.bf16 %v1036_v1  ;;  %v1044_v3 = vunpack.c.h.bf16 %v1000_v12  ;;  %v1062_v10 = vunpack.c.h.bf16 %v1036_v1  ;;  %v498_v40 = vpack.c.bf16 %v483_v62, %v482_v61 }
  0xe2   : > { %v1045_v6 = vunpack.c.l.bf16 %v1001_v13  ;;  %v1046_v16 = vunpack.c.h.bf16 %v1001_v13  ;;  %v499_v63 = vpack.c.bf16 %v485_v21, %v484_v9  ;;  %v1075_v32 = vadd.f32 %v1059_v37, %v1043_v45 }
  0xe3   : > { %v1076_v0 = vadd.f32 %v1060_v20, %v1044_v3  ;;  %v591_v30 = vmul.f32 %v2232_v49, %v2361_v38  ;;  %v592_v4 = vmul.f32 %v2234_v50, %v2361_v38  ;;  %v593_v5 = vmul.f32 %v2232_v49, %v2402_v18 }
  0xe4   : > { %v1077_v27 = vadd.f32 %v1061_v17, %v1045_v6  ;;  %v1078_v23 = vadd.f32 %v1062_v10, %v1046_v16  ;;  %v594_v35 = vmul.f32 %v2234_v50, %v2402_v18  ;;  %v1115_v26 = vmax.f32 %v1075_v32, 0.0 }
  0xe5   : > { %v1116_v46 = vmax.f32 %v1076_v0, 0.0  ;;  %v607_v42 = vpack.c.bf16 %v592_v4, %v591_v30  ;;  %v615_v53 = vunpack.c.l.bf16 %v498_v40  ;;  %v616_v57 = vunpack.c.h.bf16 %v498_v40 }
  0xe6   : > { %v1117_v58 = vmax.f32 %v1077_v27, 0.0  ;;  %v1118_v31 = vmax.f32 %v1078_v23, 0.0  ;;  %v608_v14 = vpack.c.bf16 %v594_v35, %v593_v5  ;;  %v617_v43 = vunpack.c.l.bf16 %v499_v63 }
  0xe7   : > { %v618_v28 = vunpack.c.h.bf16 %v499_v63  ;;  %v631_v60 = vunpack.c.l.bf16 %v607_v42  ;;  %v632_v11 = vunpack.c.h.bf16 %v607_v42  ;;  %v754_v50 = vmul.f32 %v2195_v24, %v2497_v2 }
  0xe8   : > { %v1131_v61 = vpack.c.bf16 %v1117_v58, %v1115_v26  ;;  %v1132_v12 = vpack.c.bf16 %v1118_v31, %v1116_v46  ;;  %v633_v1 = vunpack.c.l.bf16 %v608_v14  ;;  %v634_v62 = vunpack.c.h.bf16 %v608_v14 }
  0xe9   : > { %v647_v49 = vadd.f32 %v631_v60, %v615_v53  ;;  %v648_v9 = vadd.f32 %v632_v11, %v616_v57  ;;  %v755_v13 = vmul.f32 %v2197_v25, %v2497_v2  ;;  %v756_v21 = vmul.f32 %v2195_v24, %v2427_v54 }
  0xea   : > { %1153 = vmatpush.bf16.msra.mxu1 %v1131_v61  ;;  %1166 = vmatpush.bf16.msra.mxu2 %v1132_v12  ;;  %v649_v37 = vadd.f32 %v633_v1, %v617_v43  ;;  %v650_v20 = vadd.f32 %v634_v62, %v618_v28  ;;  %v1538_v45 = vshrl.u32 %v2524_v22, 16  ;;  %v757_v3 = vmul.f32 %v2197_v25, %v2427_v54 }
  0xeb   : > { %v663_v17 = vpack.c.bf16 %v648_v9, %v647_v49  ;;  %v770_v10 = vpack.c.bf16 %v755_v13, %v754_v50  ;;  %v1207_v6 = vpack.i.b16 %v2209_v33, %v2209_v33  ;;  %v1210_v40 = vpack.i.b16 %v2211_v34, %v2211_v34 }
  0xec   : > { %v664_v16 = vpack.c.bf16 %v650_v20, %v649_v37  ;;  %v1243_v63 = vpack.i.b16 %v1242_v8, %v1242_v8  ;;  %v1247_v32 = vpack.i.b16 %v1246_v41, %v1246_v41  ;;  %v771_v24 = vpack.c.bf16 %v757_v3, %v756_v21 }
  0xed   : > { %v778_v0 = vunpack.c.l.bf16 %v663_v17  ;;  %v794_v22 = vunpack.c.l.bf16 %v770_v10  ;;  %v779_v30 = vunpack.c.h.bf16 %v663_v17  ;;  %v795_v25 = vunpack.c.h.bf16 %v770_v10 }
  0xee   : > { %v780_v4 = vunpack.c.l.bf16 %v664_v16  ;;  %v781_v27 = vunpack.c.h.bf16 %v664_v16  ;;  %v1209_v23 = vperm.slane %v1207_v6, 0  ;;  %v796_v5 = vunpack.c.l.bf16 %v771_v24 }
  0xef   : > { %v810_v35 = vadd.f32 %v794_v22, %v778_v0  ;;  %v797_v33 = vunpack.c.h.bf16 %v771_v24  ;;  %v1212_v26 = vperm.slane %v1210_v40, 0  ;;  %v811_v46 = vadd.f32 %v795_v25, %v779_v30 }
  0xf0   : > { %v2570_v42 = vunpack.c.l.bf16 %v1209_v23  ;;  %v1245_v34 = vperm.slane %v1243_v63, 0  ;;  %v1249_v7 = vperm.slane %v1247_v32, 0  ;;  %v812_v53 = vadd.f32 %v796_v5, %v780_v4 }
  0xf1   : > { %v850_v8 = vmax.f32 %v810_v35, 0.0  ;;  %v813_v41 = vadd.f32 %v797_v33, %v781_v27  ;;  %v2572_v58 = vunpack.c.l.bf16 %v1212_v26  ;;  %v851_v31 = vmax.f32 %v811_v46, 0.0  ;;  %v2887_v35 = vld [vmem:[#allocation4_spill] sm:$0xff]  ;;  %v2888_v26 = vld [vmem:[#allocation10_spill] sm:$0xff] }
  0xf2   : > { %v1227_v14 = vmul.f32 %v2570_v42, %v2242_v56  ;;  %v1229_v57 = vmul.f32 %v2570_v42, %v2279_v48  ;;  %v2578_v43 = vunpack.c.l.bf16 %v1245_v34  ;;  %v852_v28 = vmax.f32 %v812_v53, 0.0 }
  0xf3   : > { %v853_v60 = vmax.f32 %v813_v41, 0.0  ;;  %v1228_v11 = vmul.f32 %v2572_v58, %v2242_v56  ;;  %v1230_v61 = vmul.f32 %v2572_v58, %v2279_v48  ;;  %v2584_v12 = vunpack.c.l.bf16 %v1249_v7 }
  0xf4   : > { %v1264_v1 = vmul.f32 %v2578_v43, %v2240_v55  ;;  %v1266_v62 = vmul.f32 %v2578_v43, %v2277_v47  ;;  %v1335_v49 = vpack.i.b16 %v2453_v36, %v2453_v36  ;;  %v866_v9 = vpack.c.bf16 %v852_v28, %v850_v8 }
  0xf5   : > { %v867_v50 = vpack.c.bf16 %v853_v60, %v851_v31  ;;  %v1237_v13 = vpack.c.bf16 %v1228_v11, %v1227_v14  ;;  %v1238_v37 = vpack.c.bf16 %v1230_v61, %v1229_v57  ;;  %v1265_v20 = vmul.f32 %v2584_v12, %v2240_v55 }
  0xf6   : > { %v1267_v21 = vmul.f32 %v2584_v12, %v2277_v47  ;;  %v1337_v17 = vperm.slane %v1335_v49, 1  ;;  %v1338_v3 = vpack.i.b16 %v2459_v19, %v2459_v19  ;;  %1182 = vmatpush.bf16.msra.mxu3 %v866_v9  ;;  %v1503_v0 = vpack.i.b16 %v2483_v39, %v2483_v39 }
  0xf7   : > { %1195 = vmatpush.bf16.msrb.mxu0 %v867_v50  ;;  %v1288_v10 = vunpack.c.l.bf16 %v1237_v13  ;;  %v1289_v6 = vunpack.c.h.bf16 %v1237_v13  ;;  %v1290_v16 = vunpack.c.l.bf16 %v1238_v37  ;;  %v1291_v36 = vunpack.c.h.bf16 %v1238_v37 }
  0xf8   : > { %v1274_v40 = vpack.c.bf16 %v1265_v20, %v1264_v1  ;;  %v1275_v63 = vpack.c.bf16 %v1267_v21, %v1266_v62  ;;  %v1340_v32 = vperm.slane %v1338_v3, 1  ;;  %v2598_v24 = vunpack.c.l.bf16 %v1337_v17 }
  0xf9   : > { %v1506_v22 = vpack.i.b16 %v2485_v59, %v2485_v59  ;;  %v1539_v30 = vpack.i.b16 %v1538_v45, %v1538_v45  ;;  %v1542_v19 = vshrl.u32 %v2526_v51, 16  ;;  %v1505_v34 = vperm.slane %v1503_v0, 0 }
  0xfa   : > { %v1304_v4 = vunpack.c.l.bf16 %v1274_v40  ;;  %v1305_v27 = vunpack.c.h.bf16 %v1274_v40  ;;  %v1306_v25 = vunpack.c.l.bf16 %v1275_v63  ;;  %v1307_v23 = vunpack.c.h.bf16 %v1275_v63 }
  0xfb   : > { %v2605_v5 = vunpack.c.l.bf16 %v1340_v32  ;;  %v1355_v33 = vmul.f32 %v2598_v24, %v2887_v35  ;;  %v1357_v46 = vmul.f32 %v2598_v24, %v2888_v26  ;;  %v1508_v8 = vperm.slane %v1506_v22, 0 }
  0xfc   : > { %v1320_v39 = vadd.f32 %v1304_v4, %v1288_v10  ;;  %v1321_v7 = vadd.f32 %v1305_v27, %v1289_v6  ;;  %v1322_v53 = vadd.f32 %v1306_v25, %v1290_v16  ;;  %v1323_v59 = vadd.f32 %v1307_v23, %v1291_v36 }
  0xfd   : > { %v1356_v51 = vmul.f32 %v2605_v5, %v2887_v35  ;;  %v1358_v45 = vmul.f32 %v2605_v5, %v2888_v26  ;;  %v2615_v41 = vunpack.c.l.bf16 %v1505_v34  ;;  %v1541_v57 = vperm.slane %v1539_v30, 0  ;;  %v1630_v34 = vld.sshfl [vmem:[#allocation1 + $0x8] sm:$0xff pattern:$0x73625140] }
  0xfe   : > { %v1330_v31 = vpack.c.bf16 %v1321_v7, %v1320_v39  ;;  %v1331_v14 = vpack.c.bf16 %v1323_v59, %v1322_v53  ;;  %v1543_v28 = vpack.i.b16 %v1542_v19, %v1542_v19  ;;  %v2617_v61 = vunpack.c.l.bf16 %v1508_v8 }
  0xff   : > { %v1365_v60 = vpack.c.bf16 %v1356_v51, %v1355_v33  ;;  %v1366_v11 = vpack.c.bf16 %v1358_v45, %v1357_v46  ;;  %v1523_v1 = vmul.f32 %v2615_v41, %v2242_v56  ;;  %v1525_v3 = vmul.f32 %v2615_v41, %v2279_v48  ;;  %v1629_v46 = vld.sshfl [vmem:[#allocation1] sm:$0xff pattern:$0x73625140] }
 0x100   : > { %v1379_v62 = vunpack.c.l.bf16 %v1330_v31  ;;  %v1381_v49 = vunpack.c.l.bf16 %v1331_v14  ;;  %v1380_v9 = vunpack.c.h.bf16 %v1330_v31  ;;  %v1382_v50 = vunpack.c.h.bf16 %v1331_v14 }
 0x101   : > { %v1395_v13 = vunpack.c.l.bf16 %v1365_v60  ;;  %v1397_v37 = vunpack.c.l.bf16 %v1366_v11  ;;  %v1396_v20 = vunpack.c.h.bf16 %v1365_v60  ;;  %v1398_v21 = vunpack.c.h.bf16 %v1366_v11 }
 0x102   : > { %v1524_v17 = vmul.f32 %v2617_v61, %v2242_v56  ;;  %v1526_v10 = vmul.f32 %v2617_v61, %v2279_v48  ;;  %v1545_v6 = vperm.slane %v1543_v28, 0  ;;  %v2627_v22 = vunpack.c.l.bf16 %v1541_v57 }
 0x103   : > { %v1411_v16 = vadd.f32 %v1395_v13, %v1379_v62  ;;  %v1413_v36 = vadd.f32 %v1397_v37, %v1381_v49  ;;  %v1412_v40 = vadd.f32 %v1396_v20, %v1380_v9  ;;  %v1414_v63 = vadd.f32 %v1398_v21, %v1382_v50 }
 0x104   : > { %v1533_v32 = vpack.c.bf16 %v1524_v17, %v1523_v1  ;;  %v1534_v0 = vpack.c.bf16 %v1526_v10, %v1525_v3  ;;  %v2629_v30 = vunpack.c.l.bf16 %v1545_v6  ;;  %v1560_v25 = vmul.f32 %v2627_v22, %v2240_v55 }
 0x105   : > { %v1451_v19 = vmax.f32 %v1411_v16, 0.0  ;;  %v1453_v4 = vmax.f32 %v1413_v36, 0.0  ;;  %v1452_v56 = vmax.f32 %v1412_v40, 0.0  ;;  %v1454_v27 = vmax.f32 %v1414_v63, 0.0  ;;  %v2890_v63 = vld [vmem:[#allocation2_spill] sm:$0xff] }
 0x106   : > { %v1561_v48 = vmul.f32 %v2629_v30, %v2240_v55  ;;  %v1562_v23 = vmul.f32 %v2627_v22, %v2277_v47  ;;  %v1563_v33 = vmul.f32 %v2629_v30, %v2277_v47  ;;  %v1584_v53 = vunpack.c.l.bf16 %v1533_v32  ;;  %v2642_v55 = vld [vmem:[%s2837_s5] sm:$0xf]  ;;  %v2889_v47 = vld [vmem:[#allocation14_spill] sm:$0xff] }
 0x107   : > { %v1461_v39 = vpack.c.bf16 %v1453_v4, %v1451_v19  ;;  %v1462_v7 = vpack.c.bf16 %v1454_v27, %v1452_v56  ;;  %v1585_v59 = vunpack.c.h.bf16 %v1533_v32  ;;  %v1586_v8 = vunpack.c.l.bf16 %v1534_v0 }
 0x108   : > { %v1570_v51 = vpack.c.bf16 %v1561_v48, %v1560_v25  ;;  %v1571_v45 = vpack.c.bf16 %v1563_v33, %v1562_v23  ;;  %v1587_v31 = vunpack.c.h.bf16 %v1534_v0  ;;  %v1631_v14 = vpack.i.b16 %v1629_v46, %v1629_v46 }
 0x109   : > { %1473 = vmatpush.bf16.msrb.mxu1 %v1461_v39  ;;  %1486 = vmatpush.bf16.msrb.mxu2 %v1462_v7  ;;  %v1634_v57 = vpack.i.b16 %v1630_v34, %v1630_v34  ;;  %v1139_v28 = vperm.slane %v2889_v47, 1  ;;  %v874_v13 = vperm.slane %v2889_v47, 0  ;;  %v1223_v32 = vmul.f32 %v2570_v42, %v2890_v63  ;;  %v2891_v7 = vld [vmem:[#allocation3_spill] sm:$0xff] }
 0x10a   : > { %v1600_v60 = vunpack.c.l.bf16 %v1570_v51  ;;  %v1601_v11 = vunpack.c.h.bf16 %v1570_v51  ;;  %v1602_v1 = vunpack.c.l.bf16 %v1571_v45  ;;  %v1603_v62 = vunpack.c.h.bf16 %v1571_v45  ;;  %v2892_v51 = vld [vmem:[#allocation11_spill] sm:$0xff] }
 0x10b   : > { %v1633_v49 = vperm.slane %v1631_v14, 1  ;;  %v1636_v9 = vperm.slane %v1634_v57, 1  ;;  %v1140_v50 = vmul.f32 %v1139_v28, %v2642_v55  ;;  %v875_v16 = vmul.f32 %v874_v13, %v2642_v55 }
 0x10c   : > { %v1616_v37 = vadd.f32 %v1600_v60, %v1584_v53  ;;  %v1617_v20 = vadd.f32 %v1601_v11, %v1585_v59  ;;  %v1618_v21 = vadd.f32 %v1602_v1, %v1586_v8  ;;  %v1619_v17 = vadd.f32 %v1603_v62, %v1587_v31  ;;  %v2893_v60 = vld [vmem:[#allocation7_spill] sm:$0xff] }
 0x10d   : > { %v2647_v3 = vunpack.c.l.bf16 %v1633_v49  ;;  %v2649_v10 = vunpack.c.l.bf16 %v1636_v9  ;;  %v1141_v6 = vpack.c.bf16 %v1140_v50, %v1140_v50  ;;  %v1224_v0 = vmul.f32 %v2572_v58, %v2890_v63 }
 0x10e   : > { %v1626_v36 = vpack.c.bf16 %v1617_v20, %v1616_v37  ;;  %v1627_v40 = vpack.c.bf16 %v1619_v17, %v1618_v21  ;;  %v876_v39 = vpack.c.bf16 %v875_v16, %v875_v16  ;;  %v1226_v53 = vmul.f32 %v2572_v58, %v2891_v7 }
 0x10f   : > { %v1651_v19 = vmul.f32 %v2647_v3, %v2887_v35  ;;  %v1652_v4 = vmul.f32 %v2649_v10, %v2887_v35  ;;  %v1653_v56 = vmul.f32 %v2647_v3, %v2888_v26  ;;  %v1654_v27 = vmul.f32 %v2649_v10, %v2888_v26  ;;  %1919 = vmatmul.msk.bf16.vlgmr.msra.gmra.mxu1 %vm1142_vm1, %v1141_v6 }
 0x110   : > { %v1675_v25 = vunpack.c.l.bf16 %v1626_v36  ;;  %v1676_v48 = vunpack.c.h.bf16 %v1626_v36  ;;  %v1677_v23 = vunpack.c.l.bf16 %v1627_v40  ;;  %v1678_v33 = vunpack.c.h.bf16 %v1627_v40  ;;  %1920 = vmatmul.msk.bf16.vlgmr.msra.gmra.mxu2 %vm1142_vm1, %v1141_v6  ;;  %1921 = vmatmul.msk.bf16.vlgmr.msra.gmra.mxu3 %vm1142_vm1, %v876_v39 }
 0x111   : > { %v1661_v46 = vpack.c.bf16 %v1652_v4, %v1651_v19  ;;  %v1662_v34 = vpack.c.bf16 %v1654_v27, %v1653_v56  ;;  %v1225_v35 = vmul.f32 %v2570_v42, %v2891_v7  ;;  %v1235_v59 = vpack.c.bf16 %v1224_v0, %v1223_v32  ;;  %1922 = vmatmul.msk.bf16.vlgmr.msrb.gmra.mxu0 %vm1142_vm1, %v876_v39 }
 0x112   : > { %v1260_v26 = vmul.f32 %v2578_v43, %v2892_v51  ;;  %v1261_v45 = vmul.f32 %v2584_v12, %v2892_v51  ;;  %v1262_v11 = vmul.f32 %v2578_v43, %v2893_v60  ;;  %v1263_v1 = vmul.f32 %v2584_v12, %v2893_v60 }
 0x113   : > { %v1691_v8 = vunpack.c.l.bf16 %v1661_v46  ;;  %v1692_v31 = vunpack.c.h.bf16 %v1661_v46  ;;  %v1693_v14 = vunpack.c.l.bf16 %v1662_v34  ;;  %v1694_v57 = vunpack.c.h.bf16 %v1662_v34  ;;  %v2894_v34 = vld [vmem:[#allocation13_spill] sm:$0xff] }
 0x114   : > { %v1236_v28 = vpack.c.bf16 %v1226_v53, %v1225_v35  ;;  %v1272_v62 = vpack.c.bf16 %v1261_v45, %v1260_v26  ;;  %v1273_v37 = vpack.c.bf16 %v1263_v1, %v1262_v11  ;;  %v1284_v20 = vunpack.c.l.bf16 %v1235_v59  ;;  %v2895_v53 = vld [vmem:[#allocation9_spill] sm:$0xff] }
 0x115   : > { %v1707_v49 = vadd.f32 %v1691_v8, %v1675_v25  ;;  %v1709_v9 = vadd.f32 %v1693_v14, %v1677_v23  ;;  %v1708_v50 = vadd.f32 %v1692_v31, %v1676_v48  ;;  %v1710_v13 = vadd.f32 %v1694_v57, %v1678_v33 }
 0x116   : > { %v1285_v21 = vunpack.c.h.bf16 %v1235_v59  ;;  %v1286_v17 = vunpack.c.l.bf16 %v1236_v28  ;;  %v1287_v32 = vunpack.c.h.bf16 %v1236_v28  ;;  %v1300_v0 = vunpack.c.l.bf16 %v1272_v62 }
 0x117   : > { %v1747_v6 = vmax.f32 %v1707_v49, 0.0  ;;  %v1749_v16 = vmax.f32 %v1709_v9, 0.0  ;;  %v1748_v36 = vmax.f32 %v1708_v50, 0.0  ;;  %v1750_v40 = vmax.f32 %v1710_v13, 0.0 }
 0x118   : > { %v1301_v19 = vunpack.c.h.bf16 %v1272_v62  ;;  %v1302_v4 = vunpack.c.l.bf16 %v1273_v37  ;;  %v1303_v46 = vunpack.c.h.bf16 %v1273_v37  ;;  %v1351_v25 = vmul.f32 %v2598_v24, %v2894_v34 }
 0x119   : > { %v1757_v56 = vpack.c.bf16 %v1749_v16, %v1747_v6  ;;  %v1758_v27 = vpack.c.bf16 %v1750_v40, %v1748_v36  ;;  %v1316_v48 = vadd.f32 %v1300_v0, %v1284_v20  ;;  %v1352_v39 = vmul.f32 %v2605_v5, %v2894_v34 }
 0x11a   : > { %v1317_v23 = vadd.f32 %v1301_v19, %v1285_v21  ;;  %v1318_v33 = vadd.f32 %v1302_v4, %v1286_v17  ;;  %v1319_v35 = vadd.f32 %v1303_v46, %v1287_v32  ;;  %v1353_v59 = vmul.f32 %v2598_v24, %v2895_v53 }
 0x11b   : > { %1769 = vmatpush.bf16.msrb.mxu3 %v1757_v56  ;;  %1782 = vmatpush.bf16.msra.mxu0 %v1758_v27  ;;  %v1354_v26 = vmul.f32 %v2605_v5, %v2895_v53  ;;  %v1363_v8 = vpack.c.bf16 %v1352_v39, %v1351_v25  ;;  %v1519_v31 = vmul.f32 %v2615_v41, %v2890_v63 }
 0x11c   : > { %v1328_v45 = vpack.c.bf16 %v1317_v23, %v1316_v48  ;;  %v1520_v14 = vmul.f32 %v2617_v61, %v2890_v63  ;;  %v1329_v57 = vpack.c.bf16 %v1319_v35, %v1318_v33  ;;  %v1521_v11 = vmul.f32 %v2615_v41, %v2891_v7 }
 0x11d   : > { %v1364_v28 = vpack.c.bf16 %v1354_v26, %v1353_v59  ;;  %v1522_v1 = vmul.f32 %v2617_v61, %v2891_v7  ;;  %v1391_v49 = vunpack.c.l.bf16 %v1363_v8  ;;  %v1392_v50 = vunpack.c.h.bf16 %v1363_v8 }
 0x11e   : > { %v1375_v62 = vunpack.c.l.bf16 %v1328_v45  ;;  %v1376_v9 = vunpack.c.h.bf16 %v1328_v45  ;;  %v1377_v13 = vunpack.c.l.bf16 %v1329_v57  ;;  %v1378_v20 = vunpack.c.h.bf16 %v1329_v57 }
 0x11f   : > { %v1393_v37 = vunpack.c.l.bf16 %v1364_v28  ;;  %v1394_v21 = vunpack.c.h.bf16 %v1364_v28  ;;  %v1531_v16 = vpack.c.bf16 %v1520_v14, %v1519_v31  ;;  %v1532_v63 = vpack.c.bf16 %v1522_v1, %v1521_v11 }
 0x120   : > { %v1407_v17 = vadd.f32 %v1391_v49, %v1375_v62  ;;  %v1408_v6 = vadd.f32 %v1392_v50, %v1376_v9  ;;  %v1556_v32 = vmul.f32 %v2627_v22, %v2892_v51  ;;  %v1557_v7 = vmul.f32 %v2629_v30, %v2892_v51 }
 0x121   : > { %v1409_v36 = vadd.f32 %v1393_v37, %v1377_v13  ;;  %v1410_v40 = vadd.f32 %v1394_v21, %v1378_v20  ;;  %v1558_v4 = vmul.f32 %v2627_v22, %v2893_v60  ;;  %v1559_v56 = vmul.f32 %v2629_v30, %v2893_v60  ;;  %v2896_v13 = vld [vmem:[#allocation5_spill] sm:$0xff]  ;;  %v2897_v20 = vld [vmem:[#allocation8_spill] sm:$0xff] }
 0x122   : > { %v1447_v0 = vmax.f32 %v1407_v17, 0.0  ;;  %v1448_v19 = vmax.f32 %v1408_v6, 0.0  ;;  %v1568_v25 = vpack.c.bf16 %v1557_v7, %v1556_v32  ;;  %v1580_v48 = vunpack.c.l.bf16 %v1531_v16 }
 0x123   : > { %v1449_v27 = vmax.f32 %v1409_v36, 0.0  ;;  %v1450_v46 = vmax.f32 %v1410_v40, 0.0  ;;  %v1569_v23 = vpack.c.bf16 %v1559_v56, %v1558_v4  ;;  %v1581_v33 = vunpack.c.h.bf16 %v1531_v16 }
 0x124   : > { %v1582_v39 = vunpack.c.l.bf16 %v1532_v63  ;;  %v1583_v35 = vunpack.c.h.bf16 %v1532_v63  ;;  %v1596_v45 = vunpack.c.l.bf16 %v1568_v25  ;;  %v1597_v51 = vunpack.c.h.bf16 %v1568_v25  ;;  %v2898_v25 = vld [vmem:[#allocation12_spill] sm:$0xff] }
 0x125   : > { %v1459_v59 = vpack.c.bf16 %v1449_v27, %v1447_v0  ;;  %v1460_v26 = vpack.c.bf16 %v1450_v46, %v1448_v19  ;;  %v1598_v8 = vunpack.c.l.bf16 %v1569_v23  ;;  %v1599_v31 = vunpack.c.h.bf16 %v1569_v23 }
 0x126   : > { %v1647_v14 = vmul.f32 %v2647_v3, %v2894_v34  ;;  %v1648_v60 = vmul.f32 %v2649_v10, %v2894_v34  ;;  %v1612_v57 = vadd.f32 %v1596_v45, %v1580_v48  ;;  %v1613_v28 = vadd.f32 %v1597_v51, %v1581_v33 }
 0x127   : > { %1474 = vmatpush.bf16.msrb.mxu1 %v1459_v59  ;;  %1487 = vmatpush.bf16.msrb.mxu2 %v1460_v26  ;;  %v1649_v11 = vmul.f32 %v2647_v3, %v2895_v53  ;;  %v1614_v1 = vadd.f32 %v1598_v8, %v1582_v39  ;;  %v1615_v62 = vadd.f32 %v1599_v31, %v1583_v35  ;;  %v2899_v35 = vld [vmem:[#allocation6_spill] sm:$0xff] }
 0x128   : > { %v1650_v49 = vmul.f32 %v2649_v10, %v2895_v53  ;;  %v1659_v9 = vpack.c.bf16 %v1648_v60, %v1647_v14  ;;  %v1624_v50 = vpack.c.bf16 %v1613_v28, %v1612_v57  ;;  %v1219_v37 = vmul.f32 %v2570_v42, %v2896_v13 }
 0x129   : > { %v1220_v34 = vmul.f32 %v2572_v58, %v2896_v13  ;;  %v1221_v21 = vmul.f32 %v2570_v42, %v2897_v20  ;;  %v1625_v17 = vpack.c.bf16 %v1615_v62, %v1614_v1  ;;  %v1222_v53 = vmul.f32 %v2572_v58, %v2897_v20 }
 0x12a   : > { %v1660_v6 = vpack.c.bf16 %v1650_v49, %v1649_v11  ;;  %v1687_v16 = vunpack.c.l.bf16 %v1659_v9  ;;  %v1688_v63 = vunpack.c.h.bf16 %v1659_v9  ;;  %v1671_v36 = vunpack.c.l.bf16 %v1624_v50 }
 0x12b   : > { %v1672_v40 = vunpack.c.h.bf16 %v1624_v50  ;;  %v1233_v32 = vpack.c.bf16 %v1220_v34, %v1219_v37  ;;  %v1673_v7 = vunpack.c.l.bf16 %v1625_v17  ;;  %v1674_v19 = vunpack.c.h.bf16 %v1625_v17 }
 0x12c   : > { %v1689_v0 = vunpack.c.l.bf16 %v1660_v6  ;;  %v1690_v4 = vunpack.c.h.bf16 %v1660_v6  ;;  %v1703_v56 = vadd.f32 %v1687_v16, %v1671_v36  ;;  %v1234_v46 = vpack.c.bf16 %v1222_v53, %v1221_v21 }
 0x12d   : > { %v1704_v27 = vadd.f32 %v1688_v63, %v1672_v40  ;;  %v1256_v48 = vmul.f32 %v2578_v43, %v2898_v25  ;;  %v1257_v39 = vmul.f32 %v2584_v12, %v2898_v25  ;;  %v1258_v59 = vmul.f32 %v2578_v43, %v2899_v35 }
 0x12e   : > { %v1705_v23 = vadd.f32 %v1689_v0, %v1673_v7  ;;  %v1706_v33 = vadd.f32 %v1690_v4, %v1674_v19  ;;  %v1743_v26 = vmax.f32 %v1703_v56, 0.0  ;;  %v1259_v51 = vmul.f32 %v2584_v12, %v2899_v35 }
 0x12f   : > { %v1744_v45 = vmax.f32 %v1704_v27, 0.0  ;;  %v1280_v8 = vunpack.c.l.bf16 %v1233_v32  ;;  %v1270_v60 = vpack.c.bf16 %v1257_v39, %v1256_v48  ;;  %v1281_v57 = vunpack.c.h.bf16 %v1233_v32 }
 0x130   : > { %v1745_v31 = vmax.f32 %v1705_v23, 0.0  ;;  %v1746_v14 = vmax.f32 %v1706_v33, 0.0  ;;  %v1271_v28 = vpack.c.bf16 %v1259_v51, %v1258_v59  ;;  %v1282_v11 = vunpack.c.l.bf16 %v1234_v46 }
 0x131   : > { %v1283_v1 = vunpack.c.h.bf16 %v1234_v46  ;;  %v1347_v62 = vmul.f32 %v2598_v24, %v2471_v44  ;;  %v1296_v50 = vunpack.c.l.bf16 %v1270_v60  ;;  %v1297_v37 = vunpack.c.h.bf16 %v1270_v60 }
 0x132   : > { %v1755_v49 = vpack.c.bf16 %v1745_v31, %v1743_v26  ;;  %v1756_v9 = vpack.c.bf16 %v1746_v14, %v1744_v45  ;;  %v1298_v34 = vunpack.c.l.bf16 %v1271_v28  ;;  %v1299_v21 = vunpack.c.h.bf16 %v1271_v28 }
 0x133   : > { %v1348_v17 = vmul.f32 %v2605_v5, %v2471_v44  ;;  %v1349_v6 = vmul.f32 %v2598_v24, %v2391_v52  ;;  %v1312_v16 = vadd.f32 %v1296_v50, %v1280_v8  ;;  %v1313_v63 = vadd.f32 %v1297_v37, %v1281_v57 }
 0x134   : > { %1770 = vmatpush.bf16.msrb.mxu3 %v1755_v49  ;;  %1783 = vmatpush.bf16.msra.mxu0 %v1756_v9  ;;  %v1350_v36 = vmul.f32 %v2605_v5, %v2391_v52  ;;  %v1314_v40 = vadd.f32 %v1298_v34, %v1282_v11  ;;  %v1315_v53 = vadd.f32 %v1299_v21, %v1283_v1 }
 0x135   : > { %v1361_v32 = vpack.c.bf16 %v1348_v17, %v1347_v62  ;;  %v1515_v7 = vmul.f32 %v2615_v41, %v2896_v13  ;;  %v1326_v0 = vpack.c.bf16 %v1313_v63, %v1312_v16  ;;  %v1516_v4 = vmul.f32 %v2617_v61, %v2896_v13 }
 0x136   : > { %v1362_v19 = vpack.c.bf16 %v1350_v36, %v1349_v6  ;;  %v1517_v56 = vmul.f32 %v2615_v41, %v2897_v20  ;;  %v1327_v27 = vpack.c.bf16 %v1315_v53, %v1314_v40  ;;  %v1518_v23 = vmul.f32 %v2617_v61, %v2897_v20 }
 0x137   : > { %v1387_v46 = vunpack.c.l.bf16 %v1361_v32  ;;  %v1388_v48 = vunpack.c.h.bf16 %v1361_v32  ;;  %v1371_v33 = vunpack.c.l.bf16 %v1326_v0  ;;  %v1372_v59 = vunpack.c.h.bf16 %v1326_v0 }
 0x138   : > { %v1389_v39 = vunpack.c.l.bf16 %v1362_v19  ;;  %v1390_v26 = vunpack.c.h.bf16 %v1362_v19  ;;  %v1373_v45 = vunpack.c.l.bf16 %v1327_v27  ;;  %v1374_v51 = vunpack.c.h.bf16 %v1327_v27 }
 0x139   : > { %v1529_v8 = vpack.c.bf16 %v1516_v4, %v1515_v7  ;;  %v1530_v31 = vpack.c.bf16 %v1518_v23, %v1517_v56  ;;  %v1403_v14 = vadd.f32 %v1387_v46, %v1371_v33  ;;  %v1404_v60 = vadd.f32 %v1388_v48, %v1372_v59 }
 0x13a   : > { %v1552_v13 = vmul.f32 %v2627_v22, %v2898_v25  ;;  %v1553_v57 = vmul.f32 %v2629_v30, %v2898_v25  ;;  %v1405_v28 = vadd.f32 %v1389_v39, %v1373_v45  ;;  %v1406_v11 = vadd.f32 %v1390_v26, %v1374_v51 }
 0x13b   : > { %v1554_v20 = vmul.f32 %v2627_v22, %v2899_v35  ;;  %v1555_v1 = vmul.f32 %v2629_v30, %v2899_v35  ;;  %v1443_v62 = vmax.f32 %v1403_v14, 0.0  ;;  %v1444_v49 = vmax.f32 %v1404_v60, 0.0 }
 0x13c   : > { %v1566_v9 = vpack.c.bf16 %v1553_v57, %v1552_v13  ;;  %v1576_v50 = vunpack.c.l.bf16 %v1529_v8  ;;  %v1445_v37 = vmax.f32 %v1405_v28, 0.0  ;;  %v1446_v34 = vmax.f32 %v1406_v11, 0.0 }
 0x13d   : > { %v1567_v21 = vpack.c.bf16 %v1555_v1, %v1554_v20  ;;  %v1577_v17 = vunpack.c.h.bf16 %v1529_v8  ;;  %v1578_v6 = vunpack.c.l.bf16 %v1530_v31  ;;  %v1579_v16 = vunpack.c.h.bf16 %v1530_v31 }
 0x13e   : > { %v1592_v63 = vunpack.c.l.bf16 %v1566_v9  ;;  %v1593_v25 = vunpack.c.h.bf16 %v1566_v9  ;;  %v1457_v36 = vpack.c.bf16 %v1445_v37, %v1443_v62  ;;  %v1458_v40 = vpack.c.bf16 %v1446_v34, %v1444_v49 }
 0x13f   : > { %v1594_v53 = vunpack.c.l.bf16 %v1567_v21  ;;  %v1595_v32 = vunpack.c.h.bf16 %v1567_v21  ;;  %v1643_v35 = vmul.f32 %v2647_v3, %v2471_v44  ;;  %v1644_v19 = vmul.f32 %v2649_v10, %v2471_v44 }
 0x140   : > { %v1608_v7 = vadd.f32 %v1592_v63, %v1576_v50  ;;  %v1609_v0 = vadd.f32 %v1593_v25, %v1577_v17  ;;  %1475 = vmatpush.bf16.msrb.mxu1 %v1457_v36  ;;  %1488 = vmatpush.bf16.msrb.mxu2 %v1458_v40  ;;  %v1645_v27 = vmul.f32 %v2647_v3, %v2391_v52  ;;  %v1793_v40 = vld [vmem:[%s2838_s6] sm:$0xf] }
 0x141   : > { %v1610_v4 = vadd.f32 %v1594_v53, %v1578_v6  ;;  %v1611_v56 = vadd.f32 %v1595_v32, %v1579_v16  ;;  %v1646_v48 = vmul.f32 %v2649_v10, %v2391_v52  ;;  %v1657_v23 = vpack.c.bf16 %v1644_v19, %v1643_v35  ;;  %1796 = vperm.xlu0 %1976, %v1793_v40  }
 0x142   : > { %v1622_v46 = vpack.c.bf16 %v1609_v0, %v1608_v7  ;;  %v1215_v33 = vmul.f32 %v2570_v42, %v2331_v29  ;;  %v1216_v59 = vmul.f32 %v2572_v58, %v2331_v29  ;;  %v1217_v44 = vmul.f32 %v2570_v42, %v2434_v15 }
 0x143   : > { %v1623_v39 = vpack.c.bf16 %v1611_v56, %v1610_v4  ;;  %v1218_v26 = vmul.f32 %v2572_v58, %v2434_v15  ;;  %v1658_v45 = vpack.c.bf16 %v1646_v48, %v1645_v27  ;;  %v1683_v8 = vunpack.c.l.bf16 %v1657_v23 }
 0x144   : > { %v1667_v51 = vunpack.c.l.bf16 %v1622_v46  ;;  %v1668_v31 = vunpack.c.h.bf16 %v1622_v46  ;;  %v1684_v60 = vunpack.c.h.bf16 %v1657_v23  ;;  %v1231_v13 = vpack.c.bf16 %v1216_v59, %v1215_v33 }
 0x145   : > { %v1669_v14 = vunpack.c.l.bf16 %v1623_v39  ;;  %v1670_v52 = vunpack.c.h.bf16 %v1623_v39  ;;  %v1685_v57 = vunpack.c.l.bf16 %v1658_v45  ;;  %v1686_v11 = vunpack.c.h.bf16 %v1658_v45 }
 0x146   : > { %v1699_v28 = vadd.f32 %v1683_v8, %v1667_v51  ;;  %v1232_v20 = vpack.c.bf16 %v1218_v26, %v1217_v44  ;;  %v1700_v1 = vadd.f32 %v1684_v60, %v1668_v31  ;;  %v1252_v62 = vmul.f32 %v2578_v43, %v2361_v38 }
 0x147   : > { %v1253_v42 = vmul.f32 %v2584_v12, %v2361_v38  ;;  %v1254_v58 = vmul.f32 %v2578_v43, %v2402_v18  ;;  %v1701_v49 = vadd.f32 %v1685_v57, %v1669_v14  ;;  %v1702_v50 = vadd.f32 %v1686_v11, %v1670_v52 }
 0x148   : > { %v1739_v9 = vmax.f32 %v1699_v28, 0.0  ;;  %v1255_v37 = vmul.f32 %v2584_v12, %v2402_v18  ;;  %v1740_v34 = vmax.f32 %v1700_v1, 0.0  ;;  %v1276_v17 = vunpack.c.l.bf16 %v1231_v13 }
 0x149   : > { %v1268_v21 = vpack.c.bf16 %v1253_v42, %v1252_v62  ;;  %v1277_v6 = vunpack.c.h.bf16 %v1231_v13  ;;  %v1741_v16 = vmax.f32 %v1701_v49, 0.0  ;;  %v1742_v63 = vmax.f32 %v1702_v50, 0.0 }
 0x14a   : > { %v1269_v25 = vpack.c.bf16 %v1255_v37, %v1254_v58  ;;  %v1278_v36 = vunpack.c.l.bf16 %v1232_v20  ;;  %v1279_v53 = vunpack.c.h.bf16 %v1232_v20  ;;  %v1343_v7 = vmul.f32 %v2598_v24, %v2497_v2 }
 0x14b   : > { %v1292_v43 = vunpack.c.l.bf16 %v1268_v21  ;;  %v1293_v32 = vunpack.c.h.bf16 %v1268_v21  ;;  %v1753_v12 = vpack.c.bf16 %v1741_v16, %v1739_v9  ;;  %v1754_v0 = vpack.c.bf16 %v1742_v63, %v1740_v34 }
 0x14c   : > { %v1294_v35 = vunpack.c.l.bf16 %v1269_v25  ;;  %v1295_v19 = vunpack.c.h.bf16 %v1269_v25  ;;  %v1344_v27 = vmul.f32 %v2605_v5, %v2497_v2  ;;  %v1345_v46 = vmul.f32 %v2598_v24, %v2427_v54 }
 0x14d   : > { %v1308_v4 = vadd.f32 %v1292_v43, %v1276_v17  ;;  %v1309_v56 = vadd.f32 %v1293_v32, %v1277_v6  ;;  %1771 = vmatpush.bf16.msrb.mxu3 %v1753_v12  ;;  %1784 = vmatpush.bf16.msra.mxu0 %v1754_v0  ;;  %v1346_v33 = vmul.f32 %v2605_v5, %v2427_v54  ;;  %v1463_v39 = vperm.slane %v2889_v47, 2 }
 0x14e   : > { %v1310_v48 = vadd.f32 %v1294_v35, %v1278_v36  ;;  %v1311_v23 = vadd.f32 %v1295_v19, %v1279_v53  ;;  %v1359_v44 = vpack.c.bf16 %v1344_v27, %v1343_v7  ;;  %v1511_v26 = vmul.f32 %v2615_v41, %v2331_v29 }
 0x14f   : > { %v1324_v59 = vpack.c.bf16 %v1309_v56, %v1308_v4  ;;  %v1512_v45 = vmul.f32 %v2617_v61, %v2331_v29  ;;  %v1360_v8 = vpack.c.bf16 %v1346_v33, %v1345_v46  ;;  %v1513_v24 = vmul.f32 %v2615_v41, %v2434_v15 }
 0x150   : > { %v1325_v51 = vpack.c.bf16 %v1311_v23, %v1310_v48  ;;  %v1514_v31 = vmul.f32 %v2617_v61, %v2434_v15  ;;  %v1383_v5 = vunpack.c.l.bf16 %v1359_v44  ;;  %v1384_v60 = vunpack.c.h.bf16 %v1359_v44 }
 0x151   : > { %v1367_v14 = vunpack.c.l.bf16 %v1324_v59  ;;  %v1368_v52 = vunpack.c.h.bf16 %v1324_v59  ;;  %v1385_v57 = vunpack.c.l.bf16 %v1360_v8  ;;  %v1386_v11 = vunpack.c.h.bf16 %v1360_v8 }
 0x152   : > { %v1369_v13 = vunpack.c.l.bf16 %v1325_v51  ;;  %v1370_v28 = vunpack.c.h.bf16 %v1325_v51  ;;  %v1527_v62 = vpack.c.bf16 %v1512_v45, %v1511_v26  ;;  %v1528_v29 = vpack.c.bf16 %v1514_v31, %v1513_v24 }
 0x153   : > { %v1399_v20 = vadd.f32 %v1383_v5, %v1367_v14  ;;  %v1400_v1 = vadd.f32 %v1384_v60, %v1368_v52  ;;  %v1548_v41 = vmul.f32 %v2627_v22, %v2361_v38  ;;  %v1549_v15 = vmul.f32 %v2629_v30, %v2361_v38 }
 0x154   : > { %v1401_v42 = vadd.f32 %v1385_v57, %v1369_v13  ;;  %v1402_v58 = vadd.f32 %v1386_v11, %v1370_v28  ;;  %v1550_v9 = vmul.f32 %v2627_v22, %v2402_v18  ;;  %v1551_v50 = vmul.f32 %v2629_v30, %v2402_v18 }
 0x155   : > { %v1439_v61 = vmax.f32 %v1399_v20, 0.0  ;;  %v1440_v49 = vmax.f32 %v1400_v1, 0.0  ;;  %v1564_v21 = vpack.c.bf16 %v1549_v15, %v1548_v41  ;;  %v1572_v17 = vunpack.c.l.bf16 %v1527_v62 }
 0x156   : > { %v1441_v37 = vmax.f32 %v1401_v42, 0.0  ;;  %v1442_v34 = vmax.f32 %v1402_v58, 0.0  ;;  %v1565_v6 = vpack.c.bf16 %v1551_v50, %v1550_v9  ;;  %v1573_v16 = vunpack.c.h.bf16 %v1527_v62 }
 0x157   : > { %v1574_v63 = vunpack.c.l.bf16 %v1528_v29  ;;  %v1575_v25 = vunpack.c.h.bf16 %v1528_v29  ;;  %v1588_v53 = vunpack.c.l.bf16 %v1564_v21  ;;  %v1589_v38 = vunpack.c.h.bf16 %v1564_v21 }
 0x158   : > { %v1455_v36 = vpack.c.bf16 %v1441_v37, %v1439_v61  ;;  %v1456_v40 = vpack.c.bf16 %v1442_v34, %v1440_v49  ;;  %v1590_v43 = vunpack.c.l.bf16 %v1565_v6  ;;  %v1591_v32 = vunpack.c.h.bf16 %v1565_v6 }
 0x159   : > { %v1639_v22 = vmul.f32 %v2647_v3, %v2497_v2  ;;  %v1640_v18 = vmul.f32 %v2649_v10, %v2497_v2  ;;  %v1604_v30 = vadd.f32 %v1588_v53, %v1572_v17  ;;  %v1605_v7 = vadd.f32 %v1589_v38, %v1573_v16 }
 0x15a   : > { %1476 = vmatpush.bf16.msrb.mxu1 %v1455_v36  ;;  %1489 = vmatpush.bf16.msrb.mxu2 %v1456_v40  ;;  %v1641_v12 = vmul.f32 %v2647_v3, %v2427_v54  ;;  %v1606_v0 = vadd.f32 %v1590_v43, %v1574_v63  ;;  %v1607_v35 = vadd.f32 %v1591_v32, %v1575_v25 }
 0x15b   : > { %v1642_v19 = vmul.f32 %v2649_v10, %v2427_v54  ;;  %v1655_v4 = vpack.c.bf16 %v1640_v18, %v1639_v22  ;;  %v1620_v56 = vpack.c.bf16 %v1605_v7, %v1604_v30  ;;  %v1464_v27 = vmul.f32 %v1463_v39, %v2642_v55 }
 0x15c   : > { %v1621_v46 = vpack.c.bf16 %v1607_v35, %v1606_v0  ;;  %v1759_v54 = vperm.slane %v2889_v47, 3 }
 0x15d   : > { %v1656_v48 = vpack.c.bf16 %v1642_v19, %v1641_v12  ;;  %v1679_v23 = vunpack.c.l.bf16 %v1655_v4  ;;  %v1680_v2 = vunpack.c.h.bf16 %v1655_v4  ;;  %v1663_v33 = vunpack.c.l.bf16 %v1620_v56 }
 0x15e   : > { %v1664_v59 = vunpack.c.h.bf16 %v1620_v56  ;;  %v1465_v44 = vpack.c.bf16 %v1464_v27, %v1464_v27  ;;  %v1665_v26 = vunpack.c.l.bf16 %v1621_v46  ;;  %v1666_v51 = vunpack.c.h.bf16 %v1621_v46 }
 0x15f   : > { %v1681_v45 = vunpack.c.l.bf16 %v1656_v48  ;;  %v1682_v3 = vunpack.c.h.bf16 %v1656_v48  ;;  %v1695_v8 = vadd.f32 %v1679_v23, %v1663_v33  ;;  %v1760_v60 = vmul.f32 %v1759_v54, %v2642_v55 }
 0x160   : > { %v1696_v24 = vadd.f32 %v1680_v2, %v1664_v59  ;;  %1924 = vmatmul.msk.bf16.vlgmr.msrb.gmra.mxu1 %vm1142_vm1, %v1465_v44  ;;  %1925 = vmatmul.msk.bf16.vlgmr.msrb.gmra.mxu2 %vm1142_vm1, %v1465_v44 }
 0x161   : > { %v1697_v10 = vadd.f32 %v1681_v45, %v1665_v26  ;;  %v1698_v39 = vadd.f32 %v1682_v3, %v1666_v51  ;;  %v1735_v31 = vmax.f32 %v1695_v8, 0.0  ;;  %v1761_v28 = vpack.c.bf16 %v1760_v60, %v1760_v60 }
 0x162   : > { %v1736_v14 = vmax.f32 %v1696_v24, 0.0 }
 0x163   : > { %v1737_v5 = vmax.f32 %v1697_v10, 0.0  ;;  %v1738_v52 = vmax.f32 %v1698_v39, 0.0 }
 0x165   : > { %v1751_v13 = vpack.c.bf16 %v1737_v5, %v1735_v31  ;;  %v1752_v57 = vpack.c.bf16 %v1738_v52, %v1736_v14 }
 0x167   : > { %1772 = vmatpush.bf16.msrb.mxu3 %v1751_v13  ;;  %1785 = vmatpush.bf16.msra.mxu0 %v1752_v57 }
 0x16a   : > { %1927 = vmatmul.msk.bf16.vlgmr.msrb.gmra.mxu3 %vm1142_vm1, %v1761_v28  ;;  %1928 = vmatmul.msk.bf16.vlgmr.msra.gmra.mxu0 %vm1142_vm1, %v1761_v28 }
 0x18c   : > { %v1155_v11 = vpop.f32.mrf.mxu1 }
 0x18e   : > { %v1197_v20 = vpop.f32.mrf.mxu0 }
 0x193   : > { %v1168_v47 = vpop.f32.mrf.mxu2  ;;  %v1184_v29 = vpop.f32.mrf.mxu3 }
 0x194   : > { %v1198_v1 = vadd.f32 %v1197_v20, %v1168_v47  ;;  %v1157_v62 = vpop.f32.mrf.mxu1  ;;  %v1185_v42 = vadd.f32 %v1184_v29, %v1155_v11 }
 0x196   : > { %v1199_v58 = vpop.f32.mrf.mxu0 }
 0x19b   : > { %v1170_v41 = vpop.f32.mrf.mxu2  ;;  %v1186_v55 = vpop.f32.mrf.mxu3 }
 0x1b3   : > { %v1797_v34 = vpop.permute.xlu0 %1796 }
 0x1dd   : > { %v1478_v15 = vpop.f32.mrf.mxu1 }
 0x1de   : > { %v1495_v6 = vadd.f32 %v1478_v15, %v1185_v42 }
 0x1e3   : > { %v1491_v61 = vpop.f32.mrf.mxu2 }
 0x1e4   : > { %v1496_v49 = vadd.f32 %v1491_v61, %v1198_v1 }
 0x1e5   : > { %v1480_v9 = vpop.f32.mrf.mxu1 }
 0x1e7   : > { %v1787_v50 = vpop.f32.mrf.mxu0 }
 0x1e8   : > { %v1792_v37 = vadd.f32 %v1787_v50, %v1496_v49 }
 0x1ea   : > { %v1800_v21 = vadd.f32 %v1797_v34, %v1792_v37 }
 0x1eb   : > { %v1493_v17 = vpop.f32.mrf.mxu2 }
 0x1ec   : > { %v1803_v25 = vrot.slane %v1800_v21, 4 }
 0x1ed   : > { %v1774_v16 = vpop.f32.mrf.mxu3 }
 0x1ee   : > { %v1791_v63 = vadd.f32 %v1774_v16, %v1495_v6 }
 0x1ef   : > { %v1789_v36 = vpop.f32.mrf.mxu0 }
 0x1f0   : > { %v1799_v40 = vadd.f32 %v1797_v34, %v1791_v63 }
 0x1f2   : > { %v1805_v53 = vsel %vm1804_vm2, %v1799_v40, %v1803_v25 }
 0x1f3   : > { %1807 = vst [vmem:[%s333_s8] sm:$0xff] %v1805_v53 }
 0x1f5   : > { %v1776_v38 = vpop.f32.mrf.mxu3 }
 0x1f6 PF: > { %s17_s26 = sadd.s32 1, %s2002_s26   ;;  %s2900_s24 = smov %s1998_s25 }
 0x1f7   : > { %p14_p5 = scmp.ge.s32.totalorder %s17_s26, 4   ;;  %s2901_s25 = smov %s2903_s27 }
 0x1f9   :  { %16 = sbr.rel (!%p14_p5) target bundleno = 2 (0x2), region = 84 }

</bundles_post_ra>
